<compile_context>
chip_gen: v5e
topology: v5e:2x2
jax: 0.10.0
libtpu: 0.0.40
codegen_flags: <defaults>
</compile_context>

<pallas_src>
import math

import jax
import jax.numpy as jnp
from jax import lax
from jax.experimental import pallas as pl
from jax.experimental.pallas import tpu as pltpu

_TM_MAX = 256                       # row-tile size (multiple of 8), fits v5e/v6e/v7x VMEM
_VMEM_LIMIT = 32 * 1024 * 1024      # explicit scoped-VMEM budget (>= v5e default, <= v7x physical)
_BN_EPS = 1e-5


# ----------------------------------------------------------------------------
# Small helpers
# ----------------------------------------------------------------------------
def _round_up(a, b):
    return (a + b - 1) // b * b


def _tiles(n, tm_max=_TM_MAX):
    """Pick a row tile (multiple of 8) and the padded row count."""
    tm = tm_max if n >= tm_max else _round_up(n, 8)
    return tm, _round_up(n, tm)


def _pad_rows(x, n_pad):
    n = x.shape[0]
    if n_pad == n:
        return x
    return jnp.pad(x, ((0, n_pad - n), (0, 0)))


def _cparams():
    return pltpu.CompilerParams(dimension_semantics=("parallel",),
                                vmem_limit_bytes=_VMEM_LIMIT)


# ----------------------------------------------------------------------------
# Pallas kernels
# ----------------------------------------------------------------------------
def _bias_act_kernel(act):
    def kernel(x_ref, w_ref, b_ref, o_ref):
        y = jnp.dot(x_ref[...], w_ref[...], preferred_element_type=jnp.float32)
        y = y + b_ref[...]
        if act == "relu":
            y = jnp.maximum(y, 0.0)
        elif act == "tanh":
            y = jnp.tanh(y)
        o_ref[...] = y
    return kernel


def _matmul_stats_kernel(x_ref, w_ref, o_ref, s_ref):
    # Tiled matmul + per-tile partial channel statistics (sum, sum of squares).
    y = jnp.dot(x_ref[...], w_ref[...], preferred_element_type=jnp.float32)
    o_ref[...] = y
    s_ref[0] = jnp.concatenate(
        [jnp.sum(y, axis=0, keepdims=True),
         jnp.sum(y * y, axis=0, keepdims=True)], axis=0)


def _bn_apply_kernel(relu, residual):
    if residual:
        def kernel(y_ref, sc_ref, sh_ref, r_ref, o_ref):
            y = y_ref[...] * sc_ref[...] + sh_ref[...]
            if relu:
                y = jnp.maximum(y, 0.0)
            o_ref[...] = y + r_ref[...]
    else:
        def kernel(y_ref, sc_ref, sh_ref, o_ref):
            y = y_ref[...] * sc_ref[...] + sh_ref[...]
            if relu:
                y = jnp.maximum(y, 0.0)
            o_ref[...] = y
    return kernel


def _attn_kernel(cqp):
    """One batch element: fused q/k/v projection (q/k padded to `cqp` lanes, v/out
    padded to a 128-multiple; padding is exact because padded weight/bias columns are
    zero), softmax over keys, attention matmul, residual add."""
    def kernel(x_ref, w_ref, b_ref, o_ref):
        x = x_ref[0]                                                 # (HW, CV) f32
        xb = x.astype(jnp.bfloat16)
        proj = jnp.dot(xb, w_ref[...], preferred_element_type=jnp.float32) + b_ref[...]
        q = proj[:, :cqp]
        k = proj[:, cqp:2 * cqp]
        v = proj[:, 2 * cqp:]
        s = lax.dot_general(q.astype(jnp.bfloat16), k.astype(jnp.bfloat16),
                            (((1,), (1,)), ((), ())),
                            preferred_element_type=jnp.float32)      # (HW, HW)
        s = s - jnp.max(s, axis=-1, keepdims=True)
        p = jnp.exp(s)
        p = p * pl.reciprocal(jnp.sum(p, axis=-1, keepdims=True), approx=True)
        out = jnp.dot(p.astype(jnp.bfloat16), v.astype(jnp.bfloat16),
                      preferred_element_type=jnp.float32)            # (HW, CV)
        o_ref[0] = out + x
    return kernel


# ----------------------------------------------------------------------------
# Pallas wrappers (row-tiled pallas_calls)
# ----------------------------------------------------------------------------
def matmul_bias_act(x, w, b, act):
    """(n, K) @ (K, Cout) + b, with relu/tanh, row-tiled, bf16 MXU inputs."""
    n, kdim = x.shape
    cout = w.shape[1]
    tm, n_pad = _tiles(n)
    xp = _pad_rows(x, n_pad).astype(jnp.bfloat16)
    wb = w.astype(jnp.bfloat16)
    bb = b.reshape(1, cout).astype(jnp.float32)
    out = pl.pallas_call(
        _bias_act_kernel(act),
        out_shape=jax.ShapeDtypeStruct((n_pad, cout), jnp.float32),
        grid=(n_pad // tm,),
        in_specs=[pl.BlockSpec((tm, kdim), lambda i: (i, 0)),
                  pl.BlockSpec((kdim, cout), lambda i: (0, 0)),
                  pl.BlockSpec((1, cout), lambda i: (0, 0))],
        out_specs=pl.BlockSpec((tm, cout), lambda i: (i, 0)),
        compiler_params=_cparams(),
    )(xp, wb, bb)
    return out[:n]


def matmul_with_stats(x, w):
    """Row-tiled matmul that also returns global per-channel (sum, sum_sq).

    Returns (y_padded, sums(2, Cout), n_real). Padded rows are zero and therefore
    do not perturb the statistics (the caller divides by the real count).
    """
    n, kdim = x.shape
    cout = w.shape[1]
    tm, n_pad = _tiles(n)
    xp = _pad_rows(x, n_pad).astype(jnp.bfloat16)
    wb = w.astype(jnp.bfloat16)
    ntiles = n_pad // tm
    y, part = pl.pallas_call(
        _matmul_stats_kernel,
        out_shape=(jax.ShapeDtypeStruct((n_pad, cout), jnp.float32),
                   jax.ShapeDtypeStruct((ntiles, 2, cout), jnp.float32)),
        grid=(ntiles,),
        in_specs=[pl.BlockSpec((tm, kdim), lambda i: (i, 0)),
                  pl.BlockSpec((kdim, cout), lambda i: (0, 0))],
        out_specs=(pl.BlockSpec((tm, cout), lambda i: (i, 0)),
                   pl.BlockSpec((1, 2, cout), lambda i: (i, 0, 0))),
        compiler_params=_cparams(),
    )(xp, wb)
    sums = jnp.sum(part, axis=0)     # tiny (2, Cout) reduction
    return y, sums, n


def bn_apply(y_pad, scale, shift, relu, residual=None, n_real=None):
    """Tiled elementwise y*scale + shift (+relu) (+residual), aliased in-place on y."""
    n_pad, c = y_pad.shape
    tm = min(_TM_MAX, n_pad)         # n_pad came from _tiles -> always divides evenly
    args = [y_pad,
            scale.reshape(1, c).astype(jnp.float32),
            shift.reshape(1, c).astype(jnp.float32)]
    in_specs = [pl.BlockSpec((tm, c), lambda i: (i, 0)),
                pl.BlockSpec((1, c), lambda i: (0, 0)),
                pl.BlockSpec((1, c), lambda i: (0, 0))]
    if residual is not None:
        args.append(_pad_rows(residual.astype(jnp.float32), n_pad))
        in_specs.append(pl.BlockSpec((tm, c), lambda i: (i, 0)))
    out = pl.pallas_call(
        _bn_apply_kernel(relu, residual is not None),
        out_shape=jax.ShapeDtypeStruct((n_pad, c), jnp.float32),
        grid=(n_pad // tm,),
        in_specs=in_specs,
        out_specs=pl.BlockSpec((tm, c), lambda i: (i, 0)),
        input_output_aliases={0: 0},     # write BN result in place over y
        compiler_params=_cparams(),
    )(*args)
    return out if n_real is None else out[:n_real]


def self_attention(x_f, wq, bq, wk, bk, wv, bv):
    """SAGAN-style self-attention on (B, HW, C); softmax over keys; out + x residual.

    q/k widths and the v/output width are zero-padded to multiples of 128 so every
    matmul operand and the output store are lane-dense; padding is exact and sliced
    off afterwards.
    """
    b, hw, c = x_f.shape
    cq = wq.shape[1]
    CQ = max(128, _round_up(cq, 128))          # q/k lane width
    CV = _round_up(c, 128)                     # v / output / residual lane width
    xp = x_f.astype(jnp.float32)
    if CV != c:
        xp = jnp.pad(xp, ((0, 0), (0, 0), (0, CV - c)))
    wq_p = jnp.pad(wq, ((0, CV - c), (0, CQ - cq)))
    wk_p = jnp.pad(wk, ((0, CV - c), (0, CQ - cq)))
    wv_p = jnp.pad(wv, ((0, CV - c), (0, CV - c)))
    bq_p = jnp.pad(bq, (0, CQ - cq))
    bk_p = jnp.pad(bk, (0, CQ - cq))
    bv_p = jnp.pad(bv, (0, CV - c))
    wqkv = jnp.concatenate([wq_p, wk_p, wv_p], axis=1).astype(jnp.bfloat16)   # (CV, 2CQ+CV)
    bqkv = jnp.concatenate([bq_p, bk_p, bv_p]).reshape(1, 2 * CQ + CV).astype(jnp.float32)
    # TODO(synk): for very large HW (>= ~2048) tile the kv axis flash-style to stay
    # inside v7x's 64 MiB VMEM; resolutions used here keep the HWxHW block small.
    out = pl.pallas_call(
        _attn_kernel(CQ),
        out_shape=jax.ShapeDtypeStruct((b, hw, CV), jnp.float32),
        grid=(b,),
        in_specs=[pl.BlockSpec((1, hw, CV), lambda i: (i, 0, 0)),
                  pl.BlockSpec((CV, 2 * CQ + CV), lambda i: (0, 0)),
                  pl.BlockSpec((1, 2 * CQ + CV), lambda i: (0, 0))],
        out_specs=pl.BlockSpec((1, hw, CV), lambda i: (i, 0, 0)),
        compiler_params=_cparams(),
    )(xp, wqkv, bqkv)
    return out[..., :c]


# ----------------------------------------------------------------------------
# Convolution lowerings (plain-JAX glue: 3x3 im2col + weight repacking)
# ----------------------------------------------------------------------------
def im2col_3x3(x):
    """(B,H,W,C) -> (B*H*W, 9*C); taps ordered dh-major, dw, then channel."""
    # TODO(synk): the 9-tap patch tensor is still materialized in HBM; a k*k reduction
    # grid axis with pl.Element offsets would read taps directly and cut HBM traffic further.
    B, H, W, C = x.shape
    xp = jnp.pad(x, ((0, 0), (1, 1), (1, 1), (0, 0)))
    cols = [xp[:, 1 + dh:1 + dh + H, 1 + dw:1 + dw + W, :]
            for dh in (-1, 0, 1) for dw in (-1, 0, 1)]
    return jnp.concatenate(cols, axis=-1).reshape(B * H * W, 9 * C)


# dh -> kh map for the two output phases of a stride-2 / pad-1 / k=4 transposed conv.
_KH = {0: {-1: 3, 0: 1}, 1: {0: 2, 1: 0}}


def build_subpixel_w4(w):
    """PyTorch ConvTranspose2d weight (Cin,Cout,4,4), stride 2 pad 1 ->
    combined sub-pixel weight (9*Cin, 4*Cout); columns are phase-major (r,s), channel-minor."""
    Cin, Cout = w.shape[0], w.shape[1]
    zero = jnp.zeros((Cin, Cout), w.dtype)
    rows = []
    for dh in (-1, 0, 1):
        for dw in (-1, 0, 1):
            cols = []
            for r in (0, 1):
                kh = _KH[r].get(dh)
                for s in (0, 1):
                    kw = _KH[s].get(dw)
                    cols.append(zero if (kh is None or kw is None) else w[:, :, kh, kw])
            rows.append(jnp.concatenate(cols, axis=1))
    return jnp.concatenate(rows, axis=0)


def build_s1_weight(w):
    """PyTorch ConvTranspose2d weight (Cin,Cout,3,3), stride 1 pad 1 -> (9*Cin, Cout)."""
    rows = []
    for dh in (-1, 0, 1):
        for dw in (-1, 0, 1):
            rows.append(w[:, :, 1 - dh, 1 - dw])
    return jnp.concatenate(rows, axis=0)


def pixel_shuffle2(y, C):
    """(B,H,W,4*C) phase-major -> (B,2H,2W,C)."""
    B, H, W, _ = y.shape
    y = y.reshape(B, H, W, 2, 2, C)
    y = jnp.transpose(y, (0, 1, 3, 2, 4, 5))
    return y.reshape(B, 2 * H, 2 * W, C)


def _bn_scale_shift(s1, s2, count, gamma, beta):
    mean = s1 / count
    var = jnp.maximum(s2 / count - mean * mean, 0.0)   # biased variance (train mode)
    scale = gamma * lax.rsqrt(var + _BN_EPS)
    shift = beta - mean * scale
    return scale, shift


# ----------------------------------------------------------------------------
# Generator layers
# ----------------------------------------------------------------------------
def block_convT_bn_relu(x, w, gamma, beta):
    """ConvTranspose2d(4,2,1,bias=False) + BatchNorm2d + ReLU via sub-pixel matmul."""
    B, H, W, Cin = x.shape
    Cout = w.shape[1]
    patches = im2col_3x3(x)                                          # (B*H*W, 9*Cin)
    y, sums, n = matmul_with_stats(patches, build_subpixel_w4(w))    # (N_pad, 4*Cout)
    s1 = sums[0].reshape(4, Cout).sum(axis=0)
    s2 = sums[1].reshape(4, Cout).sum(axis=0)
    scale, shift = _bn_scale_shift(s1, s2, 4.0 * n, gamma, beta)
    yb = bn_apply(y, jnp.tile(scale, 4), jnp.tile(shift, 4), relu=True, n_real=n)
    return pixel_shuffle2(yb.reshape(B, H, W, 4 * Cout), Cout)


def stride1_convT_bn(x, w, gamma, beta, relu, residual=None):
    """ConvTranspose2d(3,1,1,bias=False) + BatchNorm2d (+ReLU) (+residual add)."""
    B, H, W, Cin = x.shape
    Cout = w.shape[1]
    patches = im2col_3x3(x)
    y, sums, n = matmul_with_stats(patches, build_s1_weight(w))
    scale, shift = _bn_scale_shift(sums[0], sums[1], float(n), gamma, beta)
    res = None if residual is None else residual.reshape(n, Cout)
    yb = bn_apply(y, scale, shift, relu=relu, residual=res, n_real=n)
    return yb.reshape(B, H, W, Cout)


def final_convT_tanh(x, w, b):
    """ConvTranspose2d(C, channels_img, 4, 2, 1) + Tanh, with Cout padded so the
    matmul output is 128 lanes wide (lane-dense stores); padding sliced off after."""
    B, H, W, Cin = x.shape
    Cout = w.shape[1]
    Cpad = max(_round_up(Cout, 32), 32)                      # 4*Cpad is a multiple of 128
    wp = jnp.pad(w, ((0, 0), (0, Cpad - Cout), (0, 0), (0, 0)))
    bp = jnp.pad(b, (0, Cpad - Cout))
    patches = im2col_3x3(x)
    y = matmul_bias_act(patches, build_subpixel_w4(wp), jnp.tile(bp, 4), act="tanh")
    y = pixel_shuffle2(y.reshape(B, H, W, 4 * Cpad), Cpad)
    return y[..., :Cout]


# ----------------------------------------------------------------------------
# Parameter init (deterministic, shapes mirror the torch module)
# ----------------------------------------------------------------------------
def init_generator_params(key, z_dim, channels_img, features_g, img_size):
    num_blocks = int(math.log2(img_size)) - 3
    out_c = features_g * 2 ** num_blocks
    kit = iter(jax.random.split(key, 128))

    def rnd(shape, scale=0.05):
        return scale * jax.random.normal(next(kit), shape, jnp.float32)

    params = {
        "ct0_w": rnd((z_dim, out_c, 4, 4)),   # ConvTranspose2d weight: (Cin, Cout, kH, kW)
        "ct0_b": rnd((out_c,)),
        "blocks": [],
    }
    c = out_c
    for i in range(num_blocks):
        cin, cout = c, c // 2
        blk = {
            "conv_w": rnd((cin, cout, 4, 4)),
            "bn_g": jnp.ones((cout,), jnp.float32),
            "bn_b": jnp.zeros((cout,), jnp.float32),
        }
        if i == num_blocks // 2:
            cq = max(cout // 8, 1)
            blk["attn"] = {
                "wq": rnd((cout, cq)), "bq": rnd((cq,)),
                "wk": rnd((cout, cq)), "bk": rnd((cq,)),
                "wv": rnd((cout, cout)), "bv": rnd((cout,)),
            }
        blk["res"] = {
            "w1": rnd((cout, cout, 3, 3)),
            "g1": jnp.ones((cout,), jnp.float32), "b1": jnp.zeros((cout,), jnp.float32),
            "w2": rnd((cout, cout, 3, 3)),
            "g2": jnp.ones((cout,), jnp.float32), "b2": jnp.zeros((cout,), jnp.float32),
        }
        params["blocks"].append(blk)
        c = cout
    params["ctf_w"] = rnd((c, channels_img, 4, 4))
    params["ctf_b"] = rnd((channels_img,))
    return params


# ----------------------------------------------------------------------------
# Full forward pass (NCHW in / NCHW out)
# ----------------------------------------------------------------------------
def generator_forward(params, x_nchw):
    # TODO(synk): the first layer is specialized to the 1x1 spatial latent that the
    # DCGAN generator is defined for (ConvTranspose2d(z, out_c, 4, 1, 0) on 1x1 input).
    assert x_nchw.shape[2] == 1 and x_nchw.shape[3] == 1
    B, z = x_nchw.shape[0], x_nchw.shape[1]
    x_lat = x_nchw.reshape(B, z).astype(jnp.float32)

    # Layer 0: ConvTranspose2d(z, out_c, 4, 1, 0) + ReLU  ==  (B,z) @ (z, 16*out_c)
    w0 = params["ct0_w"]
    out_c = w0.shape[1]
    w0m = jnp.transpose(w0, (0, 2, 3, 1)).reshape(z, 16 * out_c)
    b0 = jnp.tile(params["ct0_b"], 16)
    x = matmul_bias_act(x_lat, w0m, b0, act="relu").reshape(B, 4, 4, out_c)

    for blk in params["blocks"]:
        # _block: ConvTranspose2d(4,2,1,bias=False) + BN + ReLU (sub-pixel form)
        x = block_convT_bn_relu(x, blk["conv_w"], blk["bn_g"], blk["bn_b"])

        # optional SelfAttention
        if "attn" in blk:
            Bb, H, W, C = x.shape
            a = blk["attn"]
            xf = self_attention(x.reshape(Bb, H * W, C),
                                a["wq"], a["bq"], a["wk"], a["bk"], a["wv"], a["bv"])
            x = xf.reshape(Bb, H, W, C)

        # ResidualBlock: conv(3,1,1)+BN+ReLU, conv(3,1,1)+BN, then + input
        r = blk["res"]
        h = stride1_convT_bn(x, r["w1"], r["g1"], r["b1"], relu=True)
        x = stride1_convT_bn(h, r["w2"], r["g2"], r["b2"], relu=False, residual=x)

    # Final ConvTranspose2d(c, channels_img, 4, 2, 1) + Tanh
    x = final_convT_tanh(x, params["ctf_w"], params["ctf_b"])
    return jnp.transpose(x, (0, 3, 1, 2))                        # NHWC -> NCHW


if __name__ == "__main__":
    z_dim, channels_img, features_g, img_size = 8, 3, 16, 16
    batch = 2

    key = jax.random.PRNGKey(0)
    pkey, xkey = jax.random.split(key)
    params = init_generator_params(pkey, z_dim, channels_img, features_g, img_size)
    x = jax.random.normal(xkey, (batch, z_dim, 1, 1), jnp.float32)

    out = jax.jit(generator_forward)(params, x)
    out = jax.block_until_ready(out)

    assert out.shape == (batch, channels_img, img_size, img_size), out.shape
    assert bool(jnp.all(jnp.isfinite(out)))
    assert bool(jnp.all(jnp.abs(out) <= 1.0 + 1e-6))  # tanh range
    print("KERNEL_OK")
</pallas_src>

<mosaic_0001>
module attributes {stable_mosaic.version = 11 : i64} {
  func.func @kernel(%arg0: i32, %arg1: memref<8x8xbf16, #tpu.memory_space<vmem>>, %arg2: memref<8x512xbf16, #tpu.memory_space<vmem>>, %arg3: memref<1x512xf32, #tpu.memory_space<vmem>>, %arg4: memref<8x512xf32, #tpu.memory_space<vmem>>) attributes {dimension_semantics = [#tpu.dimension_semantics<parallel>], iteration_bounds = array<i64: 1>, scalar_prefetch = 0 : i64, scratch_operands = 0 : i64, tpu.core_type = #tpu.core_type<tc>, window_params = [{transform_indices = @transform_0, window_bounds = array<i64: 8, 8>}, {pipeline_mode = #tpu.pipeline_mode<synchronous>, transform_indices = @transform_1, window_bounds = array<i64: 8, 512>}, {pipeline_mode = #tpu.pipeline_mode<synchronous>, transform_indices = @transform_2, window_bounds = array<i64: 1, 512>}, {transform_indices = @transform_3, window_bounds = array<i64: 8, 512>}]} {
    %c0 = arith.constant 0 : index
    %c0_0 = arith.constant 0 : index
    %0 = vector.load %arg1[%c0, %c0_0] : memref<8x8xbf16, #tpu.memory_space<vmem>>, vector<8x8xbf16>
    %c0_1 = arith.constant 0 : index
    %c0_2 = arith.constant 0 : index
    %1 = vector.load %arg2[%c0_1, %c0_2] : memref<8x512xbf16, #tpu.memory_space<vmem>>, vector<8x512xbf16>
    %cst = arith.constant dense<0.000000e+00> : vector<8x512xf32>
    %2 = tpu.matmul %0, %1, %cst {dimension_numbers = #tpu.dot_dimension_numbers<[1], [0], [0], [1], [0, 0, 1, 1], [], []>} : vector<8x8xbf16>, vector<8x512xbf16>, vector<8x512xf32> -> vector<8x512xf32>
    %c0_3 = arith.constant 0 : index
    %c0_4 = arith.constant 0 : index
    %3 = vector.load %arg3[%c0_3, %c0_4] : memref<1x512xf32, #tpu.memory_space<vmem>>, vector<1x512xf32>
    %4 = vector.broadcast %3 : vector<1x512xf32> to vector<8x512xf32>
    %5 = arith.addf %2, %4 : vector<8x512xf32>
    %cst_5 = arith.constant 0.000000e+00 : f32
    %6 = vector.broadcast %cst_5 : f32 to vector<8x512xf32>
    %7 = arith.maximumf %5, %6 : vector<8x512xf32>
    %c0_6 = arith.constant 0 : index
    %c0_7 = arith.constant 0 : index
    %8 = vector.load %arg4[%c0_6, %c0_7] : memref<8x512xf32, #tpu.memory_space<vmem>>, vector<8x512xf32>
    tpu.vector_store %arg4[%c0_6, %c0_7], %7 {strides = array<i32>} : memref<8x512xf32, #tpu.memory_space<vmem>>, vector<8x512xf32>,
    return
  }
  func.func @transform_0(%arg0: i32) -> (i32, i32) {
    %c0_i32 = arith.constant 0 : i32
    %c0_i32_0 = arith.constant 0 : i32
    return %arg0, %c0_i32 : i32, i32
  }
  func.func @transform_1(%arg0: i32) -> (i32, i32) {
    %c0_i32 = arith.constant 0 : i32
    %c0_i32_0 = arith.constant 0 : i32
    %c0_i32_1 = arith.constant 0 : i32
    return %c0_i32, %c0_i32_0 : i32, i32
  }
  func.func @transform_2(%arg0: i32) -> (i32, i32) {
    %c0_i32 = arith.constant 0 : i32
    %c0_i32_0 = arith.constant 0 : i32
    %c0_i32_1 = arith.constant 0 : i32
    return %c0_i32, %c0_i32_0 : i32, i32
  }
  func.func @transform_3(%arg0: i32) -> (i32, i32) {
    %c0_i32 = arith.constant 0 : i32
    %c0_i32_0 = arith.constant 0 : i32
    return %arg0, %c0_i32 : i32, i32
  }
}

module attributes {stable_mosaic.version = 11 : i64} {
  func.func @_matmul_stats_kernel(%arg0: i32, %arg1: memref<32x288xbf16, #tpu.memory_space<vmem>>, %arg2: memref<288x64xbf16, #tpu.memory_space<vmem>>, %arg3: memref<32x64xf32, #tpu.memory_space<vmem>>, %arg4: memref<1x2x64xf32, #tpu.memory_space<vmem>>) attributes {dimension_semantics = [#tpu.dimension_semantics<parallel>], iteration_bounds = array<i64: 1>, scalar_prefetch = 0 : i64, scratch_operands = 0 : i64, tpu.core_type = #tpu.core_type<tc>, window_params = [{transform_indices = @transform_0, window_bounds = array<i64: 32, 288>}, {pipeline_mode = #tpu.pipeline_mode<synchronous>, transform_indices = @transform_1, window_bounds = array<i64: 288, 64>}, {transform_indices = @transform_2, window_bounds = array<i64: 32, 64>}, {transform_indices = @transform_3, window_bounds = array<i64: 1, 2, 64>}]} {
    %c0 = arith.constant 0 : index
    %c0_0 = arith.constant 0 : index
    %0 = vector.load %arg1[%c0, %c0_0] : memref<32x288xbf16, #tpu.memory_space<vmem>>, vector<32x288xbf16>
    %c0_1 = arith.constant 0 : index
    %c0_2 = arith.constant 0 : index
    %1 = vector.load %arg2[%c0_1, %c0_2] : memref<288x64xbf16, #tpu.memory_space<vmem>>, vector<288x64xbf16>
    %cst = arith.constant dense<0.000000e+00> : vector<32x64xf32>
    %2 = tpu.matmul %0, %1, %cst {dimension_numbers = #tpu.dot_dimension_numbers<[1], [0], [0], [1], [0, 0, 1, 1], [], []>} : vector<32x288xbf16>, vector<288x64xbf16>, vector<32x64xf32> -> vector<32x64xf32>
    %c0_3 = arith.constant 0 : index
    %c0_4 = arith.constant 0 : index
    %3 = vector.load %arg3[%c0_3, %c0_4] : memref<32x64xf32, #tpu.memory_space<vmem>>, vector<32x64xf32>
    tpu.vector_store %arg3[%c0_3, %c0_4], %2 {strides = array<i32>} : memref<32x64xf32, #tpu.memory_space<vmem>>, vector<32x64xf32>,
    %cst_5 = arith.constant dense<0.000000e+00> : vector<64xf32>
    %4 = vector.multi_reduction <add>, %2, %cst_5 [0] : vector<32x64xf32> to vector<64xf32>
    %5 = vector.shape_cast %4 : vector<64xf32> to vector<1x64xf32>
    %6 = arith.mulf %2, %2 : vector<32x64xf32>
    %cst_6 = arith.constant dense<0.000000e+00> : vector<64xf32>
    %7 = vector.multi_reduction <add>, %6, %cst_6 [0] : vector<32x64xf32> to vector<64xf32>
    %8 = vector.shape_cast %7 : vector<64xf32> to vector<1x64xf32>
    %9 = tpu.concatenate %5, %8 in 0 : vector<1x64xf32>, vector<1x64xf32> -> vector<2x64xf32>
    %c0_7 = arith.constant 0 : index
    %c0_8 = arith.constant 0 : index
    %c0_9 = arith.constant 0 : index
    %10 = vector.load %arg4[%c0_7, %c0_8, %c0_9] : memref<1x2x64xf32, #tpu.memory_space<vmem>>, vector<1x2x64xf32>
    %11 = vector.shape_cast %10 : vector<1x2x64xf32> to vector<2x64xf32>
    %12 = vector.shape_cast %9 : vector<2x64xf32> to vector<1x2x64xf32>
    tpu.vector_store %arg4[%c0_7, %c0_8, %c0_9], %12 {strides = array<i32>} : memref<1x2x64xf32, #tpu.memory_space<vmem>>, vector<1x2x64xf32>,
    return
  }
  func.func @transform_0(%arg0: i32) -> (i32, i32) {
    %c0_i32 = arith.constant 0 : i32
    %c0_i32_0 = arith.constant 0 : i32
    return %arg0, %c0_i32 : i32, i32
  }
  func.func @transform_1(%arg0: i32) -> (i32, i32) {
    %c0_i32 = arith.constant 0 : i32
    %c0_i32_0 = arith.constant 0 : i32
    %c0_i32_1 = arith.constant 0 : i32
    return %c0_i32, %c0_i32_0 : i32, i32
  }
  func.func @transform_2(%arg0: i32) -> (i32, i32) {
    %c0_i32 = arith.constant 0 : i32
    %c0_i32_0 = arith.constant 0 : i32
    return %arg0, %c0_i32 : i32, i32
  }
  func.func @transform_3(%arg0: i32) -> (i32, i32, i32) {
    %c0_i32 = arith.constant 0 : i32
    %c0_i32_0 = arith.constant 0 : i32
    %c0_i32_1 = arith.constant 0 : i32
    return %arg0, %c0_i32, %c0_i32_0 : i32, i32, i32
  }
}

module attributes {stable_mosaic.version = 11 : i64} {
  func.func @kernel(%arg0: i32, %arg1: memref<32x64xf32, #tpu.memory_space<vmem>>, %arg2: memref<1x64xf32, #tpu.memory_space<vmem>>, %arg3: memref<1x64xf32, #tpu.memory_space<vmem>>, %arg4: memref<32x64xf32, #tpu.memory_space<vmem>>) attributes {dimension_semantics = [#tpu.dimension_semantics<parallel>], iteration_bounds = array<i64: 1>, scalar_prefetch = 0 : i64, scratch_operands = 0 : i64, tpu.core_type = #tpu.core_type<tc>, window_params = [{transform_indices = @transform_0, window_bounds = array<i64: 32, 64>}, {pipeline_mode = #tpu.pipeline_mode<synchronous>, transform_indices = @transform_1, window_bounds = array<i64: 1, 64>}, {pipeline_mode = #tpu.pipeline_mode<synchronous>, transform_indices = @transform_2, window_bounds = array<i64: 1, 64>}, {transform_indices = @transform_3, window_bounds = array<i64: 32, 64>}]} {
    %c0 = arith.constant 0 : index
    %c0_0 = arith.constant 0 : index
    %0 = vector.load %arg1[%c0, %c0_0] : memref<32x64xf32, #tpu.memory_space<vmem>>, vector<32x64xf32>
    %c0_1 = arith.constant 0 : index
    %c0_2 = arith.constant 0 : index
    %1 = vector.load %arg2[%c0_1, %c0_2] : memref<1x64xf32, #tpu.memory_space<vmem>>, vector<1x64xf32>
    %2 = vector.broadcast %1 : vector<1x64xf32> to vector<32x64xf32>
    %3 = arith.mulf %0, %2 : vector<32x64xf32>
    %c0_3 = arith.constant 0 : index
    %c0_4 = arith.constant 0 : index
    %4 = vector.load %arg3[%c0_3, %c0_4] : memref<1x64xf32, #tpu.memory_space<vmem>>, vector<1x64xf32>
    %5 = vector.broadcast %4 : vector<1x64xf32> to vector<32x64xf32>
    %6 = arith.addf %3, %5 : vector<32x64xf32>
    %cst = arith.constant 0.000000e+00 : f32
    %7 = vector.broadcast %cst : f32 to vector<32x64xf32>
    %8 = arith.maximumf %6, %7 : vector<32x64xf32>
    %c0_5 = arith.constant 0 : index
    %c0_6 = arith.constant 0 : index
    %9 = vector.load %arg4[%c0_5, %c0_6] : memref<32x64xf32, #tpu.memory_space<vmem>>, vector<32x64xf32>
    tpu.vector_store %arg4[%c0_5, %c0_6], %8 {strides = array<i32>} : memref<32x64xf32, #tpu.memory_space<vmem>>, vector<32x64xf32>,
    return
  }
  func.func @transform_0(%arg0: i32) -> (i32, i32) {
    %c0_i32 = arith.constant 0 : i32
    %c0_i32_0 = arith.constant 0 : i32
    return %arg0, %c0_i32 : i32, i32
  }
  func.func @transform_1(%arg0: i32) -> (i32, i32) {
    %c0_i32 = arith.constant 0 : i32
    %c0_i32_0 = arith.constant 0 : i32
    %c0_i32_1 = arith.constant 0 : i32
    return %c0_i32, %c0_i32_0 : i32, i32
  }
  func.func @transform_2(%arg0: i32) -> (i32, i32) {
    %c0_i32 = arith.constant 0 : i32
    %c0_i32_0 = arith.constant 0 : i32
    %c0_i32_1 = arith.constant 0 : i32
    return %c0_i32, %c0_i32_0 : i32, i32
  }
  func.func @transform_3(%arg0: i32) -> (i32, i32) {
    %c0_i32 = arith.constant 0 : i32
    %c0_i32_0 = arith.constant 0 : i32
    return %arg0, %c0_i32 : i32, i32
  }
}

module attributes {stable_mosaic.version = 11 : i64} {
  func.func @kernel(%arg0: i32, %arg1: memref<1x64x128xf32, #tpu.memory_space<vmem>>, %arg2: memref<128x384xbf16, #tpu.memory_space<vmem>>, %arg3: memref<1x384xf32, #tpu.memory_space<vmem>>, %arg4: memref<1x64x128xf32, #tpu.memory_space<vmem>>) attributes {dimension_semantics = [#tpu.dimension_semantics<parallel>], iteration_bounds = array<i64: 2>, scalar_prefetch = 0 : i64, scratch_operands = 0 : i64, tpu.core_type = #tpu.core_type<tc>, window_params = [{transform_indices = @transform_0, window_bounds = array<i64: 1, 64, 128>}, {pipeline_mode = #tpu.pipeline_mode<synchronous>, transform_indices = @transform_1, window_bounds = array<i64: 128, 384>}, {pipeline_mode = #tpu.pipeline_mode<synchronous>, transform_indices = @transform_2, window_bounds = array<i64: 1, 384>}, {transform_indices = @transform_3, window_bounds = array<i64: 1, 64, 128>}]} {
    %c0 = arith.constant 0 : index
    %c0_0 = arith.constant 0 : index
    %c0_1 = arith.constant 0 : index
    %0 = vector.load %arg1[%c0, %c0_0, %c0_1] : memref<1x64x128xf32, #tpu.memory_space<vmem>>, vector<1x64x128xf32>
    %1 = vector.shape_cast %0 : vector<1x64x128xf32> to vector<64x128xf32>
    %2 = arith.truncf %1 : vector<64x128xf32> to vector<64x128xbf16>
    %c0_2 = arith.constant 0 : index
    %c0_3 = arith.constant 0 : index
    %3 = vector.load %arg2[%c0_2, %c0_3] : memref<128x384xbf16, #tpu.memory_space<vmem>>, vector<128x384xbf16>
    %cst = arith.constant dense<0.000000e+00> : vector<64x384xf32>
    %4 = tpu.matmul %2, %3, %cst {dimension_numbers = #tpu.dot_dimension_numbers<[1], [0], [0], [1], [0, 0, 1, 1], [], []>} : vector<64x128xbf16>, vector<128x384xbf16>, vector<64x384xf32> -> vector<64x384xf32>
    %c0_4 = arith.constant 0 : index
    %c0_5 = arith.constant 0 : index
    %5 = vector.load %arg3[%c0_4, %c0_5] : memref<1x384xf32, #tpu.memory_space<vmem>>, vector<1x384xf32>
    %6 = vector.broadcast %5 : vector<1x384xf32> to vector<64x384xf32>
    %7 = arith.addf %4, %6 : vector<64x384xf32>
    %8 = vector.extract_strided_slice %7 {offsets = [0, 0], sizes = [64, 128], strides = [1, 1]} : vector<64x384xf32> to vector<64x128xf32>
    %9 = vector.extract_strided_slice %7 {offsets = [0, 128], sizes = [64, 128], strides = [1, 1]} : vector<64x384xf32> to vector<64x128xf32>
    %10 = vector.extract_strided_slice %7 {offsets = [0, 256], sizes = [64, 128], strides = [1, 1]} : vector<64x384xf32> to vector<64x128xf32>
    %11 = arith.truncf %8 : vector<64x128xf32> to vector<64x128xbf16>
    %12 = arith.truncf %9 : vector<64x128xf32> to vector<64x128xbf16>
    %cst_6 = arith.constant dense<0.000000e+00> : vector<64x64xf32>
    %13 = tpu.matmul %11, %12, %cst_6 {dimension_numbers = #tpu.dot_dimension_numbers<[1], [1], [0], [0], [0, 0, 1, 0], [], []>} : vector<64x128xbf16>, vector<64x128xbf16>, vector<64x64xf32> -> vector<64x64xf32>
    %cst_7 = arith.constant dense<0xFF800000> : vector<64xf32>
    %14 = vector.multi_reduction <maximumf>, %13, %cst_7 [1] : vector<64x64xf32> to vector<64xf32>
    %15 = vector.shape_cast %14 : vector<64xf32> to vector<64x1xf32>
    %16 = vector.broadcast %15 : vector<64x1xf32> to vector<64x64xf32>
    %17 = arith.subf %13, %16 : vector<64x64xf32>
    %18 = math.exp %17 : vector<64x64xf32>
    %cst_8 = arith.constant dense<0.000000e+00> : vector<64xf32>
    %19 = vector.multi_reduction <add>, %18, %cst_8 [1] : vector<64x64xf32> to vector<64xf32>
    %20 = vector.shape_cast %19 : vector<64xf32> to vector<64x1xf32>
    %21 = tpu.reciprocal %20 {approx = true} : vector<64x1xf32> -> vector<64x1xf32>
    %22 = vector.broadcast %21 : vector<64x1xf32> to vector<64x64xf32>
    %23 = arith.mulf %18, %22 : vector<64x64xf32>
    %24 = arith.truncf %23 : vector<64x64xf32> to vector<64x64xbf16>
    %25 = arith.truncf %10 : vector<64x128xf32> to vector<64x128xbf16>
    %cst_9 = arith.constant dense<0.000000e+00> : vector<64x128xf32>
    %26 = tpu.matmul %24, %25, %cst_9 {dimension_numbers = #tpu.dot_dimension_numbers<[1], [0], [0], [1], [0, 0, 1, 1], [], []>} : vector<64x64xbf16>, vector<64x128xbf16>, vector<64x128xf32> -> vector<64x128xf32>
    %27 = arith.addf %26, %1 : vector<64x128xf32>
    %c0_10 = arith.constant 0 : index
    %c0_11 = arith.constant 0 : index
    %c0_12 = arith.constant 0 : index
    %28 = vector.load %arg4[%c0_10, %c0_11, %c0_12] : memref<1x64x128xf32, #tpu.memory_space<vmem>>, vector<1x64x128xf32>
    %29 = vector.shape_cast %28 : vector<1x64x128xf32> to vector<64x128xf32>
    %30 = vector.shape_cast %27 : vector<64x128xf32> to vector<1x64x128xf32>
    tpu.vector_store %arg4[%c0_10, %c0_11, %c0_12], %30 {strides = array<i32>} : memref<1x64x128xf32, #tpu.memory_space<vmem>>, vector<1x64x128xf32>,
    return
  }
  func.func @transform_0(%arg0: i32) -> (i32, i32, i32) {
    %c0_i32 = arith.constant 0 : i32
    %c0_i32_0 = arith.constant 0 : i32
    %c0_i32_1 = arith.constant 0 : i32
    return %arg0, %c0_i32, %c0_i32_0 : i32, i32, i32
  }
  func.func @transform_1(%arg0: i32) -> (i32, i32) {
    %c0_i32 = arith.constant 0 : i32
    %c0_i32_0 = arith.constant 0 : i32
    %c0_i32_1 = arith.constant 0 : i32
    return %c0_i32, %c0_i32_0 : i32, i32
  }
  func.func @transform_2(%arg0: i32) -> (i32, i32) {
    %c0_i32 = arith.constant 0 : i32
    %c0_i32_0 = arith.constant 0 : i32
    %c0_i32_1 = arith.constant 0 : i32
    return %c0_i32, %c0_i32_0 : i32, i32
  }
  func.func @transform_3(%arg0: i32) -> (i32, i32, i32) {
    %c0_i32 = arith.constant 0 : i32
    %c0_i32_0 = arith.constant 0 : i32
    %c0_i32_1 = arith.constant 0 : i32
    return %arg0, %c0_i32, %c0_i32_0 : i32, i32, i32
  }
}

module attributes {stable_mosaic.version = 11 : i64} {
  func.func @_matmul_stats_kernel(%arg0: i32, %arg1: memref<128x144xbf16, #tpu.memory_space<vmem>>, %arg2: memref<144x16xbf16, #tpu.memory_space<vmem>>, %arg3: memref<128x16xf32, #tpu.memory_space<vmem>>, %arg4: memref<1x2x16xf32, #tpu.memory_space<vmem>>) attributes {dimension_semantics = [#tpu.dimension_semantics<parallel>], iteration_bounds = array<i64: 1>, scalar_prefetch = 0 : i64, scratch_operands = 0 : i64, tpu.core_type = #tpu.core_type<tc>, window_params = [{transform_indices = @transform_0, window_bounds = array<i64: 128, 144>}, {pipeline_mode = #tpu.pipeline_mode<synchronous>, transform_indices = @transform_1, window_bounds = array<i64: 144, 16>}, {transform_indices = @transform_2, window_bounds = array<i64: 128, 16>}, {transform_indices = @transform_3, window_bounds = array<i64: 1, 2, 16>}]} {
    %c0 = arith.constant 0 : index
    %c0_0 = arith.constant 0 : index
    %0 = vector.load %arg1[%c0, %c0_0] : memref<128x144xbf16, #tpu.memory_space<vmem>>, vector<128x144xbf16>
    %c0_1 = arith.constant 0 : index
    %c0_2 = arith.constant 0 : index
    %1 = vector.load %arg2[%c0_1, %c0_2] : memref<144x16xbf16, #tpu.memory_space<vmem>>, vector<144x16xbf16>
    %cst = arith.constant dense<0.000000e+00> : vector<128x16xf32>
    %2 = tpu.matmul %0, %1, %cst {dimension_numbers = #tpu.dot_dimension_numbers<[1], [0], [0], [1], [0, 0, 1, 1], [], []>} : vector<128x144xbf16>, vector<144x16xbf16>, vector<128x16xf32> -> vector<128x16xf32>
    %c0_3 = arith.constant 0 : index
    %c0_4 = arith.constant 0 : index
    %3 = vector.load %arg3[%c0_3, %c0_4] : memref<128x16xf32, #tpu.memory_space<vmem>>, vector<128x16xf32>
    tpu.vector_store %arg3[%c0_3, %c0_4], %2 {strides = array<i32>} : memref<128x16xf32, #tpu.memory_space<vmem>>, vector<128x16xf32>,
    %cst_5 = arith.constant dense<0.000000e+00> : vector<16xf32>
    %4 = vector.multi_reduction <add>, %2, %cst_5 [0] : vector<128x16xf32> to vector<16xf32>
    %5 = vector.shape_cast %4 : vector<16xf32> to vector<1x16xf32>
    %6 = arith.mulf %2, %2 : vector<128x16xf32>
    %cst_6 = arith.constant dense<0.000000e+00> : vector<16xf32>
    %7 = vector.multi_reduction <add>, %6, %cst_6 [0] : vector<128x16xf32> to vector<16xf32>
    %8 = vector.shape_cast %7 : vector<16xf32> to vector<1x16xf32>
    %9 = tpu.concatenate %5, %8 in 0 : vector<1x16xf32>, vector<1x16xf32> -> vector<2x16xf32>
    %c0_7 = arith.constant 0 : index
    %c0_8 = arith.constant 0 : index
    %c0_9 = arith.constant 0 : index
    %10 = vector.load %arg4[%c0_7, %c0_8, %c0_9] : memref<1x2x16xf32, #tpu.memory_space<vmem>>, vector<1x2x16xf32>
    %11 = vector.shape_cast %10 : vector<1x2x16xf32> to vector<2x16xf32>
    %12 = vector.shape_cast %9 : vector<2x16xf32> to vector<1x2x16xf32>
    tpu.vector_store %arg4[%c0_7, %c0_8, %c0_9], %12 {strides = array<i32>} : memref<1x2x16xf32, #tpu.memory_space<vmem>>, vector<1x2x16xf32>,
    return
  }
  func.func @transform_0(%arg0: i32) -> (i32, i32) {
    %c0_i32 = arith.constant 0 : i32
    %c0_i32_0 = arith.constant 0 : i32
    return %arg0, %c0_i32 : i32, i32
  }
  func.func @transform_1(%arg0: i32) -> (i32, i32) {
    %c0_i32 = arith.constant 0 : i32
    %c0_i32_0 = arith.constant 0 : i32
    %c0_i32_1 = arith.constant 0 : i32
    return %c0_i32, %c0_i32_0 : i32, i32
  }
  func.func @transform_2(%arg0: i32) -> (i32, i32) {
    %c0_i32 = arith.constant 0 : i32
    %c0_i32_0 = arith.constant 0 : i32
    return %arg0, %c0_i32 : i32, i32
  }
  func.func @transform_3(%arg0: i32) -> (i32, i32, i32) {
    %c0_i32 = arith.constant 0 : i32
    %c0_i32_0 = arith.constant 0 : i32
    %c0_i32_1 = arith.constant 0 : i32
    return %arg0, %c0_i32, %c0_i32_0 : i32, i32, i32
  }
}

module attributes {stable_mosaic.version = 11 : i64} {
  func.func @kernel(%arg0: i32, %arg1: memref<128x16xf32, #tpu.memory_space<vmem>>, %arg2: memref<1x16xf32, #tpu.memory_space<vmem>>, %arg3: memref<1x16xf32, #tpu.memory_space<vmem>>, %arg4: memref<128x16xf32, #tpu.memory_space<vmem>>) attributes {dimension_semantics = [#tpu.dimension_semantics<parallel>], iteration_bounds = array<i64: 1>, scalar_prefetch = 0 : i64, scratch_operands = 0 : i64, tpu.core_type = #tpu.core_type<tc>, window_params = [{transform_indices = @transform_0, window_bounds = array<i64: 128, 16>}, {pipeline_mode = #tpu.pipeline_mode<synchronous>, transform_indices = @transform_1, window_bounds = array<i64: 1, 16>}, {pipeline_mode = #tpu.pipeline_mode<synchronous>, transform_indices = @transform_2, window_bounds = array<i64: 1, 16>}, {transform_indices = @transform_3, window_bounds = array<i64: 128, 16>}]} {
    %c0 = arith.constant 0 : index
    %c0_0 = arith.constant 0 : index
    %0 = vector.load %arg1[%c0, %c0_0] : memref<128x16xf32, #tpu.memory_space<vmem>>, vector<128x16xf32>
    %c0_1 = arith.constant 0 : index
    %c0_2 = arith.constant 0 : index
    %1 = vector.load %arg2[%c0_1, %c0_2] : memref<1x16xf32, #tpu.memory_space<vmem>>, vector<1x16xf32>
    %2 = vector.broadcast %1 : vector<1x16xf32> to vector<128x16xf32>
    %3 = arith.mulf %0, %2 : vector<128x16xf32>
    %c0_3 = arith.constant 0 : index
    %c0_4 = arith.constant 0 : index
    %4 = vector.load %arg3[%c0_3, %c0_4] : memref<1x16xf32, #tpu.memory_space<vmem>>, vector<1x16xf32>
    %5 = vector.broadcast %4 : vector<1x16xf32> to vector<128x16xf32>
    %6 = arith.addf %3, %5 : vector<128x16xf32>
    %cst = arith.constant 0.000000e+00 : f32
    %7 = vector.broadcast %cst : f32 to vector<128x16xf32>
    %8 = arith.maximumf %6, %7 : vector<128x16xf32>
    %c0_5 = arith.constant 0 : index
    %c0_6 = arith.constant 0 : index
    %9 = vector.load %arg4[%c0_5, %c0_6] : memref<128x16xf32, #tpu.memory_space<vmem>>, vector<128x16xf32>
    tpu.vector_store %arg4[%c0_5, %c0_6], %8 {strides = array<i32>} : memref<128x16xf32, #tpu.memory_space<vmem>>, vector<128x16xf32>,
    return
  }
  func.func @transform_0(%arg0: i32) -> (i32, i32) {
    %c0_i32 = arith.constant 0 : i32
    %c0_i32_0 = arith.constant 0 : i32
    return %arg0, %c0_i32 : i32, i32
  }
  func.func @transform_1(%arg0: i32) -> (i32, i32) {
    %c0_i32 = arith.constant 0 : i32
    %c0_i32_0 = arith.constant 0 : i32
    %c0_i32_1 = arith.constant 0 : i32
    return %c0_i32, %c0_i32_0 : i32, i32
  }
  func.func @transform_2(%arg0: i32) -> (i32, i32) {
    %c0_i32 = arith.constant 0 : i32
    %c0_i32_0 = arith.constant 0 : i32
    %c0_i32_1 = arith.constant 0 : i32
    return %c0_i32, %c0_i32_0 : i32, i32
  }
  func.func @transform_3(%arg0: i32) -> (i32, i32) {
    %c0_i32 = arith.constant 0 : i32
    %c0_i32_0 = arith.constant 0 : i32
    return %arg0, %c0_i32 : i32, i32
  }
}

module attributes {stable_mosaic.version = 11 : i64} {
  func.func @kernel(%arg0: i32, %arg1: memref<128x16xf32, #tpu.memory_space<vmem>>, %arg2: memref<1x16xf32, #tpu.memory_space<vmem>>, %arg3: memref<1x16xf32, #tpu.memory_space<vmem>>, %arg4: memref<128x16xf32, #tpu.memory_space<vmem>>, %arg5: memref<128x16xf32, #tpu.memory_space<vmem>>) attributes {dimension_semantics = [#tpu.dimension_semantics<parallel>], iteration_bounds = array<i64: 1>, scalar_prefetch = 0 : i64, scratch_operands = 0 : i64, tpu.core_type = #tpu.core_type<tc>, window_params = [{transform_indices = @transform_0, window_bounds = array<i64: 128, 16>}, {pipeline_mode = #tpu.pipeline_mode<synchronous>, transform_indices = @transform_1, window_bounds = array<i64: 1, 16>}, {pipeline_mode = #tpu.pipeline_mode<synchronous>, transform_indices = @transform_2, window_bounds = array<i64: 1, 16>}, {transform_indices = @transform_3, window_bounds = array<i64: 128, 16>}, {transform_indices = @transform_4, window_bounds = array<i64: 128, 16>}]} {
    %c0 = arith.constant 0 : index
    %c0_0 = arith.constant 0 : index
    %0 = vector.load %arg1[%c0, %c0_0] : memref<128x16xf32, #tpu.memory_space<vmem>>, vector<128x16xf32>
    %c0_1 = arith.constant 0 : index
    %c0_2 = arith.constant 0 : index
    %1 = vector.load %arg2[%c0_1, %c0_2] : memref<1x16xf32, #tpu.memory_space<vmem>>, vector<1x16xf32>
    %2 = vector.broadcast %1 : vector<1x16xf32> to vector<128x16xf32>
    %3 = arith.mulf %0, %2 : vector<128x16xf32>
    %c0_3 = arith.constant 0 : index
    %c0_4 = arith.constant 0 : index
    %4 = vector.load %arg3[%c0_3, %c0_4] : memref<1x16xf32, #tpu.memory_space<vmem>>, vector<1x16xf32>
    %5 = vector.broadcast %4 : vector<1x16xf32> to vector<128x16xf32>
    %6 = arith.addf %3, %5 : vector<128x16xf32>
    %c0_5 = arith.constant 0 : index
    %c0_6 = arith.constant 0 : index
    %7 = vector.load %arg4[%c0_5, %c0_6] : memref<128x16xf32, #tpu.memory_space<vmem>>, vector<128x16xf32>
    %8 = arith.addf %6, %7 : vector<128x16xf32>
    %c0_7 = arith.constant 0 : index
    %c0_8 = arith.constant 0 : index
    %9 = vector.load %arg5[%c0_7, %c0_8] : memref<128x16xf32, #tpu.memory_space<vmem>>, vector<128x16xf32>
    tpu.vector_store %arg5[%c0_7, %c0_8], %8 {strides = array<i32>} : memref<128x16xf32, #tpu.memory_space<vmem>>, vector<128x16xf32>,
    return
  }
  func.func @transform_0(%arg0: i32) -> (i32, i32) {
    %c0_i32 = arith.constant 0 : i32
    %c0_i32_0 = arith.constant 0 : i32
    return %arg0, %c0_i32 : i32, i32
  }
  func.func @transform_1(%arg0: i32) -> (i32, i32) {
    %c0_i32 = arith.constant 0 : i32
    %c0_i32_0 = arith.constant 0 : i32
    %c0_i32_1 = arith.constant 0 : i32
    return %c0_i32, %c0_i32_0 : i32, i32
  }
  func.func @transform_2(%arg0: i32) -> (i32, i32) {
    %c0_i32 = arith.constant 0 : i32
    %c0_i32_0 = arith.constant 0 : i32
    %c0_i32_1 = arith.constant 0 : i32
    return %c0_i32, %c0_i32_0 : i32, i32
  }
  func.func @transform_3(%arg0: i32) -> (i32, i32) {
    %c0_i32 = arith.constant 0 : i32
    %c0_i32_0 = arith.constant 0 : i32
    return %arg0, %c0_i32 : i32, i32
  }
  func.func @transform_4(%arg0: i32) -> (i32, i32) {
    %c0_i32 = arith.constant 0 : i32
    %c0_i32_0 = arith.constant 0 : i32
    return %arg0, %c0_i32 : i32, i32
  }
}

module attributes {stable_mosaic.version = 11 : i64} {
  func.func @kernel(%arg0: i32, %arg1: memref<128x144xbf16, #tpu.memory_space<vmem>>, %arg2: memref<144x128xbf16, #tpu.memory_space<vmem>>, %arg3: memref<1x128xf32, #tpu.memory_space<vmem>>, %arg4: memref<128x128xf32, #tpu.memory_space<vmem>>) attributes {dimension_semantics = [#tpu.dimension_semantics<parallel>], iteration_bounds = array<i64: 1>, scalar_prefetch = 0 : i64, scratch_operands = 0 : i64, tpu.core_type = #tpu.core_type<tc>, window_params = [{transform_indices = @transform_0, window_bounds = array<i64: 128, 144>}, {pipeline_mode = #tpu.pipeline_mode<synchronous>, transform_indices = @transform_1, window_bounds = array<i64: 144, 128>}, {pipeline_mode = #tpu.pipeline_mode<synchronous>, transform_indices = @transform_2, window_bounds = array<i64: 1, 128>}, {transform_indices = @transform_3, window_bounds = array<i64: 128, 128>}]} {
    %c0 = arith.constant 0 : index
    %c0_0 = arith.constant 0 : index
    %0 = vector.load %arg1[%c0, %c0_0] : memref<128x144xbf16, #tpu.memory_space<vmem>>, vector<128x144xbf16>
    %c0_1 = arith.constant 0 : index
    %c0_2 = arith.constant 0 : index
    %1 = vector.load %arg2[%c0_1, %c0_2] : memref<144x128xbf16, #tpu.memory_space<vmem>>, vector<144x128xbf16>
    %cst = arith.constant dense<0.000000e+00> : vector<128x128xf32>
    %2 = tpu.matmul %0, %1, %cst {dimension_numbers = #tpu.dot_dimension_numbers<[1], [0], [0], [1], [0, 0, 1, 1], [], []>} : vector<128x144xbf16>, vector<144x128xbf16>, vector<128x128xf32> -> vector<128x128xf32>
    %c0_3 = arith.constant 0 : index
    %c0_4 = arith.constant 0 : index
    %3 = vector.load %arg3[%c0_3, %c0_4] : memref<1x128xf32, #tpu.memory_space<vmem>>, vector<1x128xf32>
    %4 = vector.broadcast %3 : vector<1x128xf32> to vector<128x128xf32>
    %5 = arith.addf %2, %4 : vector<128x128xf32>
    %6 = math.tanh %5 : vector<128x128xf32>
    %c0_5 = arith.constant 0 : index
    %c0_6 = arith.constant 0 : index
    %7 = vector.load %arg4[%c0_5, %c0_6] : memref<128x128xf32, #tpu.memory_space<vmem>>, vector<128x128xf32>
    tpu.vector_store %arg4[%c0_5, %c0_6], %6 {strides = array<i32>} : memref<128x128xf32, #tpu.memory_space<vmem>>, vector<128x128xf32>,
    return
  }
  func.func @transform_0(%arg0: i32) -> (i32, i32) {
    %c0_i32 = arith.constant 0 : i32
    %c0_i32_0 = arith.constant 0 : i32
    return %arg0, %c0_i32 : i32, i32
  }
  func.func @transform_1(%arg0: i32) -> (i32, i32) {
    %c0_i32 = arith.constant 0 : i32
    %c0_i32_0 = arith.constant 0 : i32
    %c0_i32_1 = arith.constant 0 : i32
    return %c0_i32, %c0_i32_0 : i32, i32
  }
  func.func @transform_2(%arg0: i32) -> (i32, i32) {
    %c0_i32 = arith.constant 0 : i32
    %c0_i32_0 = arith.constant 0 : i32
    %c0_i32_1 = arith.constant 0 : i32
    return %c0_i32, %c0_i32_0 : i32, i32
  }
  func.func @transform_3(%arg0: i32) -> (i32, i32) {
    %c0_i32 = arith.constant 0 : i32
    %c0_i32_0 = arith.constant 0 : i32
    return %arg0, %c0_i32 : i32, i32
  }
}

</mosaic_0001>

<bundles_post_ra>
// kernel: tile.23
= control target key start
LH: loop header
LB: loop body
LE: loop exit
PB: predicated region body
PF: predicated region fallthrough
CT: control target
= control target key end

     0   :  { %s28_s0 = inlined_call_operand.vmem [shape: f32[32], index: 0, kind: input, shape index: {}]   ;;  %s29_s1 = inlined_call_operand.vmem [shape: f32[16,32], index: 1, kind: output, shape index: {}]  }
   0x1   :  { %v4_v0 = vld [vmem:[%s28_s0] ss:$0 sm:$0xff] }
   0x2   :  { %5 = vst [vmem:[%s29_s1] sm:$0xff] %v4_v0 }
   0x3   :  { %8 = vst [vmem:[%s29_s1 + $0x8] sm:$0xff] %v4_v0 }

// kernel: tile.24
= control target key start
LH: loop header
LB: loop body
LE: loop exit
PB: predicated region body
PF: predicated region fallthrough
CT: control target
= control target key end

     0   :  { %s56_s8 = smov 96   ;;  %s57_s11 = smov 32   ;;  %vm3_vm0 = vcmask 261120   ;;  %vm9_vm1 = vcmask 1048320   ;;  %vm15_vm2 = vcmask 785920   ;;  %vm21_vm3 = vcmask 523520   ;;  %s93_s0 = inlined_call_operand.vmem [shape: f32[16,32], index: 0, kind: input, shape index: {}]   ;;  %s94_s1 = inlined_call_operand.vmem [shape: f32[1,512], index: 1, kind: output, shape index: {}]  }
   0x1   :  { %v47_v0 = vld [vmem:[%s93_s0 + $0x3] ss:$4 sm:$0xf]   ;;  %v49_v1 = vld [vmem:[%s93_s0 + $0x1] ss:$4 sm:$0xf]  }
   0x2   :  { %7 = vrot.lane.b32.xlu0 %v47_v0, %s56_s8  ;;  %19 = vrot.lane.b32.xlu1 %v49_v1, %s57_s11  ;;  %v48_v2 = vld [vmem:[%s93_s0 + $0x2] ss:$4 sm:$0xf]   ;;  %s58_s14 = smov 64  }
   0x3   :  { %v2_v3 = vld [vmem:[%s93_s0] ss:$4 sm:$0xf]  }
   0x4   :  { %4 = vst.msk [vmem:[#allocation0] ss:$8 sm:$0xf] %vm3_vm0, %v2_v3  }
   0xa   :  { %13 = vrot.lane.b32.xlu0 %v48_v2, %s58_s14 }
  0x74   :  { %v8_v4 = vpop.permute.xlu0 %7   ;;  %v20_v5 = vpop.permute.xlu1 %19  }
  0x75   :  { %10 = vst.msk [vmem:[#allocation0] ss:$8 sm:$0xf] %vm9_vm1, %v8_v4  }
  0x7c   :  { %v14_v6 = vpop.permute.xlu0 %13  }
  0x7d   :  { %16 = vst.msk [vmem:[#allocation0] ss:$8 sm:$0xf] %vm15_vm2, %v14_v6  }
  0x7e   :  { %22 = vst.msk [vmem:[#allocation0] ss:$8 sm:$0xf] %vm21_vm3, %v20_v5  }
  0x85   :  { %v25_v7 = vld [vmem:[#allocation0] sm:$0x1]  ;;  %v30_v8 = vld [vmem:[#allocation0 + $0x8] sm:$0x1]  ;;  %v36_v9 = vld [vmem:[#allocation0 + $0x10] sm:$0x1] }
  0x86   :  { %28 = vst [vmem:[%s94_s1] sm:$0x1] %v25_v7  ;;  %v42_v10 = vld [vmem:[#allocation0 + $0x18] sm:$0x1] }
  0x87   :  { %50 = vst [vmem:[%s94_s1 + $0x1] sm:$0x1] %v30_v8 }
  0x88   :  { %51 = vst [vmem:[%s94_s1 + $0x2] sm:$0x1] %v36_v9 }
  0x89   :  { %52 = vst [vmem:[%s94_s1 + $0x3] sm:$0x1] %v42_v10 }

// kernel: squeeze.72
= control target key start
LH: loop header
LB: loop body
LE: loop exit
PB: predicated region body
PF: predicated region fallthrough
CT: control target
= control target key end

     0   :  { %s37_s8 = smov 80   ;;  %s38_s9 = smov 96   ;;  %vm7_vm0 = vcmask 130048   ;;  %s55_s0 = inlined_call_operand.vmem [shape: f32[64], index: 0, kind: input, shape index: {}]   ;;  %s56_s1 = inlined_call_operand.vmem [shape: f32[4,16], index: 1, kind: output, shape index: {}]  }
   0x1   :  { %v4_v0 = vld [vmem:[%s55_s0] sm:$0x1]  ;;  %s36_s0 = smov 112  }
   0x2   :  { %5 = vst [vmem:[#allocation1] sm:$0x1] %v4_v0 }
   0x9   :  { %v9_v1 = vld [vmem:[#allocation1] sm:$0x1]  }
   0xa   :  { %v21_v2 = vld [vmem:[#allocation1] sm:$0x1]   ;;  %10 = vrot.lane.b32.xlu0 %v9_v1, %s36_s0 }
   0xb   :  { %22 = vrot.lane.b32.xlu1 %v21_v2, %s37_s8  ;;  %v15_v3 = vld [vmem:[#allocation1] sm:$0x1]  }
   0xc   :  { %v6_v4 = vld [vmem:[#allocation1] sm:$0x1]  }
   0xd   :  { %8 = vst.msk [vmem:[#allocation0] sm:$0x1] %vm7_vm0, %v6_v4  }
  0x12   :  { %16 = vrot.lane.b32.xlu0 %v15_v3, %s38_s9 }
  0x7c   :  { %v11_v5 = vpop.permute.xlu0 %10  }
  0x7d   :  { %v23_v6 = vpop.permute.xlu1 %22   ;;  %14 = vst.msk [vmem:[#allocation0 + $0x1] sm:$0x1] %vm7_vm0, %v11_v5  }
  0x7e   :  { %26 = vst.msk [vmem:[#allocation0 + $0x3] sm:$0x1] %vm7_vm0, %v23_v6  }
  0x84   :  { %v17_v7 = vpop.permute.xlu0 %16  }
  0x85   :  { %20 = vst.msk [vmem:[#allocation0 + $0x2] sm:$0x1] %vm7_vm0, %v17_v7  }
  0x8c   :  { %v29_v8 = vld [vmem:[#allocation0] sm:$0xf] }
  0x8d   :  { %32 = vst [vmem:[%s56_s1] sm:$0xf] %v29_v8 }

// kernel: tile.28
= control target key start
LH: loop header
LB: loop body
LE: loop exit
PB: predicated region body
PF: predicated region fallthrough
CT: control target
= control target key end

     0   :  { %s22_s0 = inlined_call_operand.vmem [shape: f32[16], index: 0, kind: input, shape index: {}]   ;;  %s23_s1 = inlined_call_operand.vmem [shape: f32[4,16], index: 1, kind: output, shape index: {}]  }
   0x1   :  { %v4_v0 = vld [vmem:[%s22_s0] ss:$0 sm:$0xff] }
   0x2   :  { %5 = vst [vmem:[%s23_s1] sm:$0xf] %v4_v0 }

// kernel: tile.33
= control target key start
LH: loop header
LB: loop body
LE: loop exit
PB: predicated region body
PF: predicated region fallthrough
CT: control target
= control target key end

     0   :  { %s37_s8 = smov 16   ;;  %s38_s9 = smov 32   ;;  %vm7_vm0 = vcmask 130048   ;;  %vm13_vm1 = vcmask 523648   ;;  %vm19_vm2 = vcmask 392448   ;;  %vm25_vm3 = vcmask 261248   ;;  %s55_s0 = inlined_call_operand.vmem [shape: f32[4,16], index: 0, kind: input, shape index: {}]   ;;  %s56_s1 = inlined_call_operand.vmem [shape: f32[1,64], index: 1, kind: output, shape index: {}]  }
   0x1   :  { %v4_v0 = vld [vmem:[%s55_s0] sm:$0xf]  ;;  %s36_s0 = smov 48  }
   0x2   :  { %5 = vst [vmem:[#allocation1] sm:$0xf] %v4_v0 }
   0x9   :  { %v10_v1 = vld [vmem:[#allocation1 + $0x3] sm:$0x1]   ;;  %v22_v2 = vld [vmem:[#allocation1 + $0x1] sm:$0x1]   ;;  %v16_v3 = vld [vmem:[#allocation1 + $0x2] sm:$0x1]  }
   0xa   :  { %11 = vrot.lane.b32.xlu0 %v10_v1, %s36_s0  ;;  %23 = vrot.lane.b32.xlu1 %v22_v2, %s37_s8  ;;  %v6_v4 = vld [vmem:[#allocation1] sm:$0x1]  }
   0xb   :  { %8 = vst.msk [vmem:[#allocation0] sm:$0x1] %vm7_vm0, %v6_v4  }
  0x12   :  { %17 = vrot.lane.b32.xlu0 %v16_v3, %s38_s9 }
  0x7c   :  { %v12_v5 = vpop.permute.xlu0 %11   ;;  %v24_v6 = vpop.permute.xlu1 %23  }
  0x7d   :  { %14 = vst.msk [vmem:[#allocation0] sm:$0x1] %vm13_vm1, %v12_v5  }
  0x84   :  { %v18_v7 = vpop.permute.xlu0 %17  }
  0x85   :  { %20 = vst.msk [vmem:[#allocation0] sm:$0x1] %vm19_vm2, %v18_v7  }
  0x86   :  { %26 = vst.msk [vmem:[#allocation0] sm:$0x1] %vm25_vm3, %v24_v6  }
  0x8d   :  { %v29_v8 = vld [vmem:[#allocation0] sm:$0x1] }
  0x8e   :  { %32 = vst [vmem:[%s56_s1] sm:$0x1] %v29_v8 }

// kernel: generator_forward.9
= control target key start
LH: loop header
LB: loop body
LE: loop exit
PB: predicated region body
PF: predicated region fallthrough
CT: control target
= control target key end

     0   :  { %vm42_vm0 = vcmask 1043456   ;;  %vm38_vm1 = vcmask 64512   ;;  %s167_s1 = inlined_call_operand.vmem [shape: bf16[8,512], index: 1, kind: input, shape index: {}]   ;;  %s168_s0 = inlined_call_operand.vmem [shape: bf16[8,8], index: 0, kind: input, shape index: {}]   ;;  %s169_s2 = inlined_call_operand.vmem [shape: f32[1,512], index: 2, kind: input, shape index: {}]   ;;  %s170_s3 = inlined_call_operand.vmem [shape: f32[8,512], index: 3, kind: output, shape index: {}]  }
   0x1   :  { %v16_v0 = vld [vmem:[%s167_s1] sm:$0xff]  ;;  %v17_v1 = vld [vmem:[%s167_s1 + $0x8] sm:$0xff] }
   0x2   :  { %v30_v2 = vunpack.c.l.b16 %v16_v0  ;;  %v31_v3 = vunpack.c.h.b16 %v16_v0  ;;  %v32_v4 = vunpack.c.l.b16 %v17_v1  ;;  %v33_v5 = vunpack.c.h.b16 %v17_v1  ;;  %v15_v14 = vld [vmem:[%s168_s0] sm:$0xf] }
   0x3   :  { %v18_v15 = vld [vmem:[%s169_s2] sm:$0xf] }
   0x4   :  { %v34_v6 = vpack.c.b16 %v30_v2, %v30_v2  ;;  %v35_v7 = vpack.c.b16 %v31_v3, %v31_v3  ;;  %v36_v8 = vpack.c.b16 %v32_v4, %v32_v4  ;;  %v37_v9 = vpack.c.b16 %v33_v5, %v33_v5 }
   0x5   :  { %v20_v16 = vperm.slane %v18_v15, 0  ;;  %v21_v17 = vperm.slane %v18_v15, 1  ;;  %v22_v24 = vperm.slane %v18_v15, 2  ;;  %v23_v25 = vperm.slane %v18_v15, 3 }
   0x6   :  { %v44_v10 = vsel %vm42_vm0, %v34_v6, 0  ;;  %v47_v11 = vsel %vm42_vm0, %v35_v7, 0  ;;  %v50_v12 = vsel %vm42_vm0, %v36_v8, 0  ;;  %v53_v13 = vsel %vm42_vm0, %v37_v9, 0 }
   0x7   :  { %62 = vmatpush.bf16.msra.mxu0 %v44_v10  ;;  %75 = vmatpush.bf16.msra.mxu1 %v47_v11 }
   0x8   :  { %88 = vmatpush.bf16.msra.mxu2 %v50_v12  ;;  %101 = vmatpush.bf16.msra.mxu3 %v53_v13 }
   0xa   :  { %119 = vmatmul.msk.bf16.vlgmr.msra.gmra.mxu0 %vm38_vm1, %v15_v14  ;;  %120 = vmatmul.msk.bf16.vlgmr.msra.gmra.mxu1 %vm38_vm1, %v15_v14 }
   0xb   :  { %121 = vmatmul.msk.bf16.vlgmr.msra.gmra.mxu2 %vm38_vm1, %v15_v14  ;;  %122 = vmatmul.msk.bf16.vlgmr.msra.gmra.mxu3 %vm38_vm1, %v15_v14 }
  0x87   :  { %v64_v18 = vpop.f32.mrf.mxu0  ;;  %v77_v19 = vpop.f32.mrf.mxu1 }
  0x88   :  { %v65_v20 = vadd.f32 %v64_v18, %v20_v16  ;;  %v78_v21 = vadd.f32 %v77_v19, %v21_v17 }
  0x8a   :  { %v107_v22 = vmax.f32 %v65_v20, 0.0  ;;  %v108_v23 = vmax.f32 %v78_v21, 0.0 }
  0x8c   :  { %111 = vst [vmem:[%s170_s3] sm:$0xff] %v107_v22 }
  0x8d   :  { %112 = vst [vmem:[%s170_s3 + $0x8] sm:$0xff] %v108_v23 }
  0x8e   :  { %v90_v26 = vpop.f32.mrf.mxu2  ;;  %v103_v27 = vpop.f32.mrf.mxu3 }
  0x8f   :  { %v91_v28 = vadd.f32 %v90_v26, %v22_v24  ;;  %v104_v29 = vadd.f32 %v103_v27, %v23_v25  ;;  %v66_v30 = vpop.f32.mrf.mxu0  ;;  %v79_v31 = vpop.f32.mrf.mxu1 }
  0x91   :  { %v109_v32 = vmax.f32 %v91_v28, 0.0  ;;  %v110_v33 = vmax.f32 %v104_v29, 0.0 }
  0x93   :  { %113 = vst [vmem:[%s170_s3 + $0x10] sm:$0xff] %v109_v32 }
  0x94   :  { %114 = vst [vmem:[%s170_s3 + $0x18] sm:$0xff] %v110_v33 }
  0x96   :  { %v92_v34 = vpop.f32.mrf.mxu2  ;;  %v105_v35 = vpop.f32.mrf.mxu3 }

// kernel: generator_forward.10
= control target key start
LH: loop header
LB: loop body
LE: loop exit
PB: predicated region body
PF: predicated region fallthrough
CT: control target
= control target key end

     0   :  { %vm196_vm0 = vcmask 261120   ;;  %vm260_vm1 = vcmask 523264   ;;  %vm295_vm2 = vcmask 1040384   ;;  %vm297_vm3 = vcmask 517120   ;;  %s576_s1 = inlined_call_operand.vmem [shape: bf16[288,64], index: 1, kind: input, shape index: {}]   ;;  %s577_s0 = inlined_call_operand.vmem [shape: bf16[32,288], index: 0, kind: input, shape index: {}]   ;;  %s578_s2 = inlined_call_operand.vmem [shape: f32[32,64], index: 2, kind: output, shape index: {0}]   ;;  %s579_s3 = inlined_call_operand.vmem [shape: f32[1,2,64], index: 3, kind: output, shape index: {1}]  }
   0x1   :  { %v418_v0 = vld [vmem:[%s576_s1 + $0x38] sm:$0xff]  ;;  %v417_v2 = vld [vmem:[%s576_s1 + $0x30] sm:$0xff]  ;;  %v428_v4 = vld [vmem:[%s576_s1 + $0x88] sm:$0xff] }
   0x2   :  { %v426_v1 = vld [vmem:[%s576_s1 + $0x78] sm:$0xff]  ;;  %203 = vmatpush.bf16.msra.mxu0 %v418_v0  ;;  %v425_v3 = vld [vmem:[%s576_s1 + $0x70] sm:$0xff]  ;;  %429 = vmatpush.bf16.msra.mxu3 %v418_v0  ;;  %v427_v5 = vld [vmem:[%s576_s1 + $0x80] sm:$0xff] }
   0x3   :  { %222 = vmatpush.bf16.msra.mxu1 %v426_v1  ;;  %247 = vmatpush.bf16.msra.mxu2 %v428_v4  ;;  %v317_v6 = vld [vmem:[%s577_s0 + $0x8] sm:$0xf]  ;;  %v407_v7 = vld [vmem:[%s577_s0 + $0x10] sm:$0xf0]  ;;  %v415_v11 = vld [vmem:[%s576_s1 + $0x20] sm:$0xff] }
   0x4   :  { %v416_v8 = vld [vmem:[%s576_s1 + $0x28] sm:$0xff]  ;;  %v318_v10 = vor.u32 %v407_v7, %v317_v6  ;;  %v423_v12 = vld [vmem:[%s576_s1 + $0x60] sm:$0xff]  ;;  %v414_v13 = vld [vmem:[%s576_s1 + $0x18] sm:$0xff] }
   0x5   :  { %v424_v9 = vld [vmem:[%s576_s1 + $0x68] sm:$0xff]  ;;  %v422_v14 = vld [vmem:[%s576_s1 + $0x58] sm:$0xff]  ;;  %v413_v15 = vld [vmem:[%s576_s1 + $0x10] sm:$0xff] }
   0x6   :  { %204 = vmatpush.bf16.msra.mxu0 %v417_v2  ;;  %430 = vmatpush.bf16.msra.mxu3 %v417_v2  ;;  %v421_v16 = vld [vmem:[%s576_s1 + $0x50] sm:$0xff]  ;;  %v329_v17 = vld [vmem:[%s577_s0 + $0x20] sm:$0xf]  ;;  %v410_v18 = vld [vmem:[%s577_s0 + $0x28] sm:$0xf0] }
   0x7   :  { %223 = vmatpush.bf16.msra.mxu1 %v425_v3  ;;  %248 = vmatpush.bf16.msra.mxu2 %v427_v5  ;;  %v412_v19 = vld [vmem:[%s576_s1 + $0x8] sm:$0xff]  ;;  %v330_v21 = vor.u32 %v410_v18, %v329_v17  ;;  %v411_v22 = vld [vmem:[%s576_s1] sm:$0xff]  ;;  %v311_v27 = vld [vmem:[%s577_s0 + $0xc] sm:$0xf0] }
   0x8   :  { %v420_v20 = vld [vmem:[%s576_s1 + $0x48] sm:$0xff]  ;;  %v419_v23 = vld [vmem:[%s576_s1 + $0x40] sm:$0xff]  ;;  %v321_v28 = vld [vmem:[%s577_s0 + $0x18] sm:$0xf] }
   0x9   :  { %v309_v24 = vld [vmem:[%s577_s0] sm:$0xf]  ;;  %v406_v25 = vld [vmem:[%s577_s0 + $0x8] sm:$0xf0]  ;;  %v405_v26 = vld [vmem:[%s577_s0 + $0x4] sm:$0xf] }
   0xa   :  { %205 = vmatpush.bf16.msra.mxu0 %v416_v8  ;;  %431 = vmatpush.bf16.msra.mxu3 %v416_v8  ;;  %v409_v29 = vld [vmem:[%s577_s0 + $0x20] sm:$0xf0]  ;;  %v310_v30 = vor.u32 %v406_v25, %v309_v24  ;;  %v314_v31 = vor.u32 %v405_v26, %v311_v27  ;;  %v408_v33 = vld [vmem:[%s577_s0 + $0x1c] sm:$0xf]  ;;  %v323_v34 = vld [vmem:[%s577_s0 + $0x24] sm:$0xf0] }
   0xb   :  { %224 = vmatpush.bf16.msra.mxu1 %v424_v9  ;;  %403 = vmatmul.msk.bf16.vlgmr.msra.gmra.mxu2 %vm196_vm0, %v318_v10  ;;  %v322_v32 = vor.u32 %v409_v29, %v321_v28  ;;  %v326_v35 = vor.u32 %v408_v33, %v323_v34 }
   0xe   :  { %206 = vmatpush.bf16.msra.mxu0 %v415_v11  ;;  %432 = vmatpush.bf16.msra.mxu3 %v415_v11 }
   0xf   :  { %225 = vmatpush.bf16.msra.mxu1 %v423_v12 }
  0x12   :  { %207 = vmatpush.bf16.msra.mxu0 %v414_v13  ;;  %433 = vmatpush.bf16.msra.mxu3 %v414_v13 }
  0x13   :  { %226 = vmatpush.bf16.msra.mxu1 %v422_v14 }
  0x16   :  { %208 = vmatpush.bf16.msra.mxu0 %v413_v15  ;;  %434 = vmatpush.bf16.msra.mxu3 %v413_v15 }
  0x17   :  { %227 = vmatpush.bf16.msra.mxu1 %v421_v16 }
  0x1a   :  { %209 = vmatpush.bf16.msra.mxu0 %v412_v19  ;;  %435 = vmatpush.bf16.msra.mxu3 %v412_v19 }
  0x1b   :  { %228 = vmatpush.bf16.msra.mxu1 %v420_v20  ;;  %404 = vmatmul.msk.bf16.gmra.mxu2 %vm196_vm0, %v330_v21 }
  0x1e   :  { %210 = vmatpush.bf16.msra.mxu0 %v411_v22  ;;  %436 = vmatpush.bf16.msra.mxu3 %v411_v22 }
  0x1f   :  { %229 = vmatpush.bf16.msra.mxu1 %v419_v23 }
  0x21   :  { %211 = vmatmul.bf16.vlgmr.msra.gmra.mxu0 %v310_v30  ;;  %216 = vmatmul.bf16.vlgmr.msra.gmra.mxu3 %v322_v32 }
  0x22   :  { %230 = vmatmul.bf16.vlgmr.msra.gmra.mxu1 %v314_v31 }
  0x32   :  { %235 = vmatmul.bf16.gmra.mxu1 %v326_v35 }
  0x8e   :  { %v250_v36 = vpop.f32.mrf.mxu2 }
  0x96   :  { %v252_v41 = vpop.f32.mrf.mxu2 }
  0x9e   :  { %v212_v37 = vpop.f32.mrf.mxu0  ;;  %v255_v47 = vpop.f32.mrf.mxu2 }
  0x9f   :  { %v231_v38 = vpop.f32.mrf.mxu1 }
  0xa0   :  { %v232_v39 = vadd.f32 %v231_v38, %v212_v37 }
  0xa2   :  { %v251_v40 = vadd.f32 %v250_v36, %v232_v39 }
  0xa4   :  { %261 = vst.msk [vmem:[%s578_s2] sm:$0xff] %vm260_vm1, %v251_v40  ;;  %v217_v46 = vpop.f32.mrf.mxu3  ;;  %v278_v52 = vmul.f32 %v251_v40, %v251_v40  ;;  %v265_v57 = vsel %vm260_vm1, %v251_v40, 0.0 }
  0xa6   :  { %v214_v42 = vpop.f32.mrf.mxu0  ;;  %v257_v62 = vpop.f32.mrf.mxu2  ;;  %v282_v63 = vsel %vm260_vm1, %v278_v52, 0.0 }
  0xa7   :  { %v233_v43 = vpop.f32.mrf.mxu1 }
  0xa8   :  { %v234_v44 = vadd.f32 %v233_v43, %v214_v42 }
  0xaa   :  { %v253_v45 = vadd.f32 %v252_v41, %v234_v44 }
  0xac   :  { %262 = vst.msk [vmem:[%s578_s2 + $0x8] sm:$0xff] %vm260_vm1, %v253_v45  ;;  %v279_v51 = vmul.f32 %v253_v45, %v253_v45  ;;  %v266_v53 = vsel %vm260_vm1, %v253_v45, 0.0  ;;  %v219_v55 = vpop.f32.mrf.mxu3 }
  0xad   :  { %v267_v61 = vadd.f32 %v266_v53, %v265_v57 }
  0xae   :  { %v283_v58 = vsel %vm260_vm1, %v279_v51, 0.0 }
  0xaf   :  { %v236_v48 = vpop.f32.mrf.mxu1  ;;  %v284_v2 = vadd.f32 %v283_v58, %v282_v63 }
  0xb0   :  { %v237_v49 = vadd.f32 %v236_v48, %v217_v46 }
  0xb2   :  { %v256_v50 = vadd.f32 %v255_v47, %v237_v49 }
  0xb4   :  { %263 = vst.msk [vmem:[%s578_s2 + $0x10] sm:$0xff] %vm260_vm1, %v256_v50  ;;  %v280_v54 = vmul.f32 %v256_v50, %v256_v50  ;;  %v268_v59 = vsel %vm260_vm1, %v256_v50, 0.0 }
  0xb5   :  { %v269_v3 = vadd.f32 %v268_v59, %v267_v61 }
  0xb6   :  { %v285_v0 = vsel %vm260_vm1, %v280_v54, 0.0 }
  0xb7   :  { %v238_v56 = vpop.f32.mrf.mxu1  ;;  %v286_v6 = vadd.f32 %v285_v0, %v284_v2 }
  0xb8   :  { %v239_v60 = vadd.f32 %v238_v56, %v219_v55 }
  0xba   :  { %v258_v1 = vadd.f32 %v257_v62, %v239_v60 }
  0xbc   :  { %264 = vst.msk [vmem:[%s578_s2 + $0x18] sm:$0xff] %vm260_vm1, %v258_v1  ;;  %v270_v4 = vsel %vm260_vm1, %v258_v1, 0.0  ;;  %v281_v5 = vmul.f32 %v258_v1, %v258_v1 }
  0xbd   :  { %v271_v7 = vadd.f32 %v270_v4, %v269_v3 }
  0xbe   :  { %v287_v8 = vsel %vm260_vm1, %v281_v5, 0.0 }
  0xbf   :  { %v272_v9 = vrot.slane %v271_v7, 4  ;;  %v288_v10 = vadd.f32 %v287_v8, %v286_v6 }
  0xc1   :  { %v273_v11 = vadd.f32 %v272_v9, %v271_v7  ;;  %v289_v12 = vrot.slane %v288_v10, 4 }
  0xc3   :  { %v274_v13 = vrot.slane %v273_v11, 2  ;;  %v290_v14 = vadd.f32 %v289_v12, %v288_v10 }
  0xc5   :  { %v275_v15 = vadd.f32 %v274_v13, %v273_v11  ;;  %v291_v16 = vrot.slane %v290_v14, 2 }
  0xc7   :  { %v276_v17 = vrot.slane %v275_v15, 1  ;;  %v292_v18 = vadd.f32 %v291_v16, %v290_v14 }
  0xc9   :  { %v293_v19 = vrot.slane %v292_v18, 1  ;;  %v277_v20 = vadd.f32 %v276_v17, %v275_v15 }
  0xcb   :  { %v294_v21 = vadd.f32 %v293_v19, %v292_v18 }
  0xcd   :  { %v296_v22 = vsel %vm295_vm2, %v277_v20, %v294_v21 }
  0xce   :  { %298 = vst.msk [vmem:[%s579_s3] sm:$0x3] %vm297_vm3, %v296_v22 }

// kernel: generator_forward.11
= control target key start
LH: loop header
LB: loop body
LE: loop exit
PB: predicated region body
PF: predicated region fallthrough
CT: control target
= control target key end

     0   :  { %vm38_vm0 = vcmask 523264   ;;  %s99_s0 = inlined_call_operand.vmem [shape: f32[32,64], index: 0, kind: input, shape index: {}, may-alias: {0,3}]   ;;  %s100_s1 = inlined_call_operand.vmem [shape: f32[1,64], index: 1, kind: input, shape index: {}]   ;;  %s101_s2 = inlined_call_operand.vmem [shape: f32[1,64], index: 2, kind: input, shape index: {}]   ;;  %s102_s3 = inlined_call_operand.vmem [shape: f32[32,64], index: 3, kind: output, shape index: {}, may-alias: {0,3}]  }
   0x1   :  { %v14_v0 = vld [vmem:[%s99_s0] sm:$0xff]  ;;  %v15_v3 = vld [vmem:[%s99_s0 + $0x8] sm:$0xff]  ;;  %v16_v6 = vld [vmem:[%s99_s0 + $0x10] sm:$0xff] }
   0x2   :  { %v47_v1 = vld [vmem:[%s100_s1] ss:$0 sm:$0xff]  ;;  %v17_v7 = vld [vmem:[%s99_s0 + $0x18] sm:$0xff] }
   0x3   :  { %v48_v2 = vld [vmem:[%s101_s2] ss:$0 sm:$0xff]  ;;  %v22_v4 = vmul.f32 %v47_v1, %v14_v0  ;;  %v23_v5 = vmul.f32 %v47_v1, %v15_v3  ;;  %v24_v8 = vmul.f32 %v47_v1, %v16_v6  ;;  %v25_v9 = vmul.f32 %v47_v1, %v17_v7 }
   0x5   :  { %v30_v10 = vadd.f32 %v48_v2, %v22_v4  ;;  %v31_v11 = vadd.f32 %v48_v2, %v23_v5  ;;  %v32_v12 = vadd.f32 %v48_v2, %v24_v8  ;;  %v33_v13 = vadd.f32 %v48_v2, %v25_v9 }
   0x7   :  { %v34_v14 = vmax.f32 %v30_v10, 0.0  ;;  %v35_v15 = vmax.f32 %v31_v11, 0.0  ;;  %v36_v16 = vmax.f32 %v32_v12, 0.0  ;;  %v37_v17 = vmax.f32 %v33_v13, 0.0 }
   0x9   :  { %39 = vst.msk [vmem:[%s102_s3] sm:$0xff] %vm38_vm0, %v34_v14 }
   0xa   :  { %40 = vst.msk [vmem:[%s102_s3 + $0x8] sm:$0xff] %vm38_vm0, %v35_v15 }
   0xb   :  { %41 = vst.msk [vmem:[%s102_s3 + $0x10] sm:$0xff] %vm38_vm0, %v36_v16 }
   0xc   :  { %42 = vst.msk [vmem:[%s102_s3 + $0x18] sm:$0xff] %vm38_vm0, %v37_v17 }

// kernel: generator_forward.12
= control target key start
LH: loop header
LB: loop body
LE: loop exit
PB: predicated region body
PF: predicated region fallthrough
CT: control target
= control target key end

     0   :  { %s898_s12 = smov 0   ;;  %s1194_s0 = inlined_call_operand.vmem [shape: f32[2,64,128], index: 0, kind: input, shape index: {}]   ;;  %s1195_s1 = inlined_call_operand.vmem [shape: bf16[128,384], index: 1, kind: input, shape index: {}]   ;;  %s1196_s2 = inlined_call_operand.vmem [shape: f32[1,384], index: 2, kind: input, shape index: {}]   ;;  %s1197_s3 = inlined_call_operand.vmem [shape: f32[2,64,128], index: 3, kind: output, shape index: {}]  }
   0x1 LB: > { %s677_s13 = sadd.s32 4294967295, %s876_s12   ;;  %p681_p0 = scmp.ge.s32.totalorder %s876_s12, 1  ;;  %s876_s12 = sphi %s898_s12, %s13_s12  }
   0x2   : > { %p137_p1 = scmp.lt.s32.totalorder %s876_s12, 3 }
   0x4   : > { %p138_p2 = pnand %p681_p0, %p137_p1 }
   0x5   : > { %p161_p3 = scmp.lt.s32.totalorder (!%p138_p2), %s677_s13, 1 }
   0x6   : > { %141 = sbr.rel (%p138_p2) target bundleno = 875 (0x36b), region = 32 }
   0xb   : > { %v772_v0 = vld [vmem:[%s1195_s1 + $0xa8] sm:$0xf]  ;;  %v812_v1 = vld [vmem:[%s1195_s1 + $0xb0] sm:$0xf0]  ;;  %v760_v2 = vld [vmem:[%s1195_s1 + $0x90] sm:$0xf] }
   0xc   : > { %v773_v3 = vor.u32 %v812_v1, %v772_v0  ;;  %v809_v4 = vld [vmem:[%s1195_s1 + $0x98] sm:$0xf0]  ;;  %v748_v6 = vld [vmem:[%s1195_s1 + $0x78] sm:$0xf]  ;;  %v806_v7 = vld [vmem:[%s1195_s1 + $0x80] sm:$0xf0] }
   0xd   : > { %v761_v5 = vor.u32 %v809_v4, %v760_v2  ;;  %v749_v8 = vor.u32 %v806_v7, %v748_v6  ;;  %v736_v9 = vld [vmem:[%s1195_s1 + $0x60] sm:$0xf]  ;;  %v803_v10 = vld [vmem:[%s1195_s1 + $0x68] sm:$0xf0]  ;;  %v724_v12 = vld [vmem:[%s1195_s1 + $0x48] sm:$0xf] }
   0xe   : > { %814 = vmatpush.bf16.msra.mxu1 %v773_v3  ;;  %352 = vmatpush.bf16.msra.mxu0 %v773_v3  ;;  %v737_v11 = vor.u32 %v803_v10, %v736_v9  ;;  %v800_v13 = vld [vmem:[%s1195_s1 + $0x50] sm:$0xf0]  ;;  %v712_v15 = vld [vmem:[%s1195_s1 + $0x30] sm:$0xf]  ;;  %v797_v16 = vld [vmem:[%s1195_s1 + $0x38] sm:$0xf0] }
   0xf   : > { %815 = vmatpush.bf16.msra.mxu2 %v773_v3  ;;  %v725_v14 = vor.u32 %v800_v13, %v724_v12  ;;  %s1199_s13 = smov (!%p161_p3, %s677_s13), 1  ;;  %v713_v17 = vor.u32 %v797_v16, %v712_v15  ;;  %v700_v18 = vld [vmem:[%s1195_s1 + $0x18] sm:$0xf]  ;;  %v794_v19 = vld [vmem:[%s1195_s1 + $0x20] sm:$0xf0]  ;;  %vm476_vm0 = vcmask 523264  }
  0x10   : > { %s788_s17 = sshll.u32 %s1199_s13, 6  ;;  %v701_v20 = vor.u32 %v794_v19, %v700_v18  ;;  %v688_v21 = vld [vmem:[%s1195_s1] sm:$0xf]  ;;  %v791_v22 = vld [vmem:[%s1195_s1 + $0x8] sm:$0xf0] }
  0x11   : > { %s966_s24 = scalar_lea.vmem %s1194_s0, %s788_s17  ;;  %v811_v23 = vld [vmem:[%s1195_s1 + $0xac] sm:$0xf]  ;;  %v774_v24 = vld [vmem:[%s1195_s1 + $0xb4] sm:$0xf0]  ;;  %v689_v25 = vor.u32 %v791_v22, %v688_v21  ;;  %v808_v29 = vld [vmem:[%s1195_s1 + $0x94] sm:$0xf]  ;;  %s170_s21 = scalar_lea.vmem %s1197_s3, %s788_s17 }
  0x12   : > { %816 = vmatpush.bf16.msra.mxu1 %v761_v5  ;;  %353 = vmatpush.bf16.msra.mxu0 %v761_v5  ;;  %v975_v26 = vld [vmem:[%s966_s24 + $0x10] sm:$0xff]  ;;  %v978_v27 = vld [vmem:[%s966_s24 + $0x18] sm:$0xff]  ;;  %v777_v28 = vor.u32 %v811_v23, %v774_v24  ;;  %v762_v30 = vld [vmem:[%s1195_s1 + $0x9c] sm:$0xf0] }
  0x13   : > { %817 = vmatpush.bf16.msra.mxu2 %v761_v5  ;;  %v987_v31 = vld [vmem:[%s966_s24] sm:$0xff]  ;;  %v990_v32 = vld [vmem:[%s966_s24 + $0x8] sm:$0xff]  ;;  %v994_v33 = vpack.c.bf16 %v978_v27, %v975_v26  ;;  %v765_v34 = vor.u32 %v808_v29, %v762_v30  ;;  %v805_v36 = vld [vmem:[%s1195_s1 + $0x7c] sm:$0xf] }
  0x14   : > { %v998_v35 = vpack.c.bf16 %v990_v32, %v987_v31  ;;  %v750_v37 = vld [vmem:[%s1195_s1 + $0x84] sm:$0xf0]  ;;  %v802_v39 = vld [vmem:[%s1195_s1 + $0x64] sm:$0xf]  ;;  %v738_v40 = vld [vmem:[%s1195_s1 + $0x6c] sm:$0xf0] }
  0x15   : > { %v753_v38 = vor.u32 %v805_v36, %v750_v37  ;;  %v741_v41 = vor.u32 %v802_v39, %v738_v40  ;;  %v799_v42 = vld [vmem:[%s1195_s1 + $0x4c] sm:$0xf]  ;;  %v726_v43 = vld [vmem:[%s1195_s1 + $0x54] sm:$0xf0]  ;;  %v1021_v44 = vld [vmem:[%s966_s24 + $0x20] sm:$0xff] }
  0x16   : > { %818 = vmatpush.bf16.msra.mxu1 %v749_v8  ;;  %354 = vmatpush.bf16.msra.mxu0 %v749_v8  ;;  %v1024_v45 = vld [vmem:[%s966_s24 + $0x28] sm:$0xff]  ;;  %v729_v46 = vor.u32 %v799_v42, %v726_v43  ;;  %v796_v47 = vld [vmem:[%s1195_s1 + $0x34] sm:$0xf]  ;;  %v714_v48 = vld [vmem:[%s1195_s1 + $0x3c] sm:$0xf0] }
  0x17   : > { %819 = vmatpush.bf16.msra.mxu2 %v749_v8  ;;  %v1034_v49 = vpack.c.bf16 %v1024_v45, %v1021_v44  ;;  %v717_v50 = vor.u32 %v796_v47, %v714_v48  ;;  %v793_v51 = vld [vmem:[%s1195_s1 + $0x1c] sm:$0xf]  ;;  %v702_v52 = vld [vmem:[%s1195_s1 + $0x24] sm:$0xf0]  ;;  %v790_v54 = vld [vmem:[%s1195_s1 + $0x4] sm:$0xf] }
  0x18   : > { %v705_v53 = vor.u32 %v793_v51, %v702_v52  ;;  %v690_v55 = vld [vmem:[%s1195_s1 + $0xc] sm:$0xf0]  ;;  %v1054_v58 = vld [vmem:[%s966_s24 + $0x38] sm:$0xff]  ;;  %v1067_v61 = vld [vmem:[%s1196_s2] sm:$0x7] }
  0x19   : > { %v693_v56 = vor.u32 %v790_v54, %v690_v55  ;;  %v1051_v57 = vld [vmem:[%s966_s24 + $0x30] sm:$0xff]  ;;  %v1070_v62 = vperm.slane %v1067_v61, 0  ;;  %v219_v9 = vperm.slane %v1067_v61, 1  ;;  %v768_v42 = vld [vmem:[%s1195_s1 + $0x98] sm:$0xf] }
  0x1a   : > { %820 = vmatpush.bf16.msra.mxu1 %v737_v11  ;;  %355 = vmatpush.bf16.msra.mxu0 %v737_v11  ;;  %v1058_v59 = vpack.c.bf16 %v1054_v58, %v1051_v57  ;;  %v780_v40 = vld [vmem:[%s1195_s1 + $0xb0] sm:$0xf]  ;;  %v756_v48 = vld [vmem:[%s1195_s1 + $0x80] sm:$0xf]  ;;  %v744_v52 = vld [vmem:[%s1195_s1 + $0x68] sm:$0xf] }
  0x1b   : > { %821 = vmatpush.bf16.msra.mxu2 %v737_v11  ;;  %v732_v55 = vld [vmem:[%s1195_s1 + $0x50] sm:$0xf] }
  0x1e   : > { %822 = vmatpush.bf16.msra.mxu1 %v725_v14  ;;  %356 = vmatpush.bf16.msra.mxu0 %v725_v14 }
  0x1f   : > { %823 = vmatpush.bf16.msra.mxu2 %v725_v14 }
  0x22   : > { %824 = vmatpush.bf16.msra.mxu1 %v713_v17  ;;  %357 = vmatpush.bf16.msra.mxu0 %v713_v17 }
  0x23   : > { %825 = vmatpush.bf16.msra.mxu2 %v713_v17 }
  0x26   : > { %826 = vmatpush.bf16.msra.mxu1 %v701_v20  ;;  %358 = vmatpush.bf16.msra.mxu0 %v701_v20 }
  0x27   : > { %827 = vmatpush.bf16.msra.mxu2 %v701_v20 }
  0x2a   : > { %828 = vmatpush.bf16.msra.mxu1 %v689_v25  ;;  %359 = vmatpush.bf16.msra.mxu0 %v689_v25 }
  0x2b   : > { %829 = vmatpush.bf16.msra.mxu2 %v689_v25 }
  0x2d   : > { %365 = vmatmul.bf16.vlgmr.msra.gmra.mxu1 %v994_v33  ;;  %360 = vmatmul.bf16.vlgmr.msra.gmra.mxu0 %v998_v35 }
  0x2e   : > { %381 = vmatpush.bf16.msrb.mxu1 %v777_v28  ;;  %375 = vmatmul.bf16.vlgmr.msra.gmra.mxu2 %v1058_v59 }
  0x32   : > { %382 = vmatpush.bf16.msrb.mxu1 %v765_v34 }
  0x36   : > { %383 = vmatpush.bf16.msrb.mxu1 %v753_v38 }
  0x3a   : > { %384 = vmatpush.bf16.msrb.mxu1 %v741_v41  ;;  %v813_v41 = vld [vmem:[%s1195_s1 + $0xb8] sm:$0xf0] }
  0x3b   : > { %v781_v43 = vor.u32 %v813_v41, %v780_v40 }
  0x3d   : > { %370 = vmatmul.bf16.gmra.mxu1 %v1034_v49  ;;  %410 = vmatpush.bf16.msrb.mxu2 %v781_v43 }
  0x3e   : > { %385 = vmatpush.bf16.msrb.mxu1 %v729_v46  ;;  %v810_v46 = vld [vmem:[%s1195_s1 + $0xa0] sm:$0xf0] }
  0x3f   : > { %v769_v47 = vor.u32 %v810_v46, %v768_v42 }
  0x41   : > { %411 = vmatpush.bf16.msrb.mxu2 %v769_v47 }
  0x42   : > { %386 = vmatpush.bf16.msrb.mxu1 %v717_v50  ;;  %v807_v50 = vld [vmem:[%s1195_s1 + $0x88] sm:$0xf0] }
  0x43   : > { %v757_v51 = vor.u32 %v807_v50, %v756_v48 }
  0x45   : > { %412 = vmatpush.bf16.msrb.mxu2 %v757_v51 }
  0x46   : > { %387 = vmatpush.bf16.msrb.mxu1 %v705_v53  ;;  %v804_v53 = vld [vmem:[%s1195_s1 + $0x70] sm:$0xf0] }
  0x47   : > { %v745_v54 = vor.u32 %v804_v53, %v744_v52  ;;  %v220_v53 = vperm.slane %v1067_v61, 2 }
  0x49   : > { %413 = vmatpush.bf16.msrb.mxu2 %v745_v54 }
  0x4a   : > { %388 = vmatpush.bf16.msrb.mxu1 %v693_v56  ;;  %v801_v56 = vld [vmem:[%s1195_s1 + $0x58] sm:$0xf0] }
  0x4d   : > { %389 = vmatmul.bf16.vlgmr.msrb.gmra.mxu1 %v998_v35 }
  0x5d   : > { %394 = vmatmul.bf16.gmra.mxu1 %v994_v33 }
  0x6d   : > { %399 = vmatmul.bf16.gmra.mxu1 %v1034_v49 }
  0x7d   : > { %404 = vmatmul.bf16.gmra.mxu1 %v1058_v59 }
  0xaa   : > { %v366_v60 = vpop.f32.mrf.mxu1  ;;  %v361_v30 = vpop.f32.mrf.mxu0 }
  0xab   : > { %v367_v0 = vadd.f32 %v366_v60, %v1070_v62  ;;  %v362_v37 = vadd.f32 %v361_v30, %v1070_v62 }
  0xb1   : > { %v376_v60 = vpop.f32.mrf.mxu2 }
  0xb2   : > { %v368_v63 = vpop.f32.mrf.mxu1  ;;  %v363_v36 = vpop.f32.mrf.mxu0 }
  0xb3   : > { %v369_v1 = vadd.f32 %v368_v63, %v1070_v62  ;;  %v364_v38 = vadd.f32 %v363_v36, %v1070_v62  ;;  %v733_v63 = vor.u32 %v801_v56, %v732_v55 }
  0xb5   : > { %v440_v2 = vpack.c.bf16 %v369_v1, %v367_v0  ;;  %v439_v39 = vpack.c.bf16 %v364_v38, %v362_v37  ;;  %v720_v0 = vld [vmem:[%s1195_s1 + $0x38] sm:$0xf]  ;;  %v798_v1 = vld [vmem:[%s1195_s1 + $0x40] sm:$0xf0]  ;;  %414 = vmatpush.bf16.msrb.mxu2 %v733_v63 }
  0xba   : > { %v371_v3 = vpop.f32.mrf.mxu1 }
  0xbb   : > { %v372_v5 = vadd.f32 %v371_v3, %v1070_v62  ;;  %v708_v3 = vld [vmem:[%s1195_s1 + $0x20] sm:$0xf] }
  0xc2   : > { %v373_v4 = vpop.f32.mrf.mxu1 }
  0xc3   : > { %v374_v6 = vadd.f32 %v373_v4, %v1070_v62  ;;  %v795_v4 = vld [vmem:[%s1195_s1 + $0x28] sm:$0xf0] }
  0xc5   : > { %v441_v7 = vpack.c.bf16 %v374_v6, %v372_v5  ;;  %v378_v5 = vpop.f32.mrf.mxu2  ;;  %v709_v6 = vor.u32 %v795_v4, %v708_v3 }
  0xca   : > { %v390_v8 = vpop.f32.mrf.mxu1 }
  0xcb   : > { %v391_v11 = vadd.f32 %v390_v8, %v219_v9  ;;  %v792_v8 = vld [vmem:[%s1195_s1 + $0x10] sm:$0xf0] }
  0xd2   : > { %v392_v10 = vpop.f32.mrf.mxu1 }
  0xd3   : > { %v393_v12 = vadd.f32 %v392_v10, %v219_v9  ;;  %v379_v10 = vadd.f32 %v378_v5, %v1070_v62 }
  0xd5   : > { %v443_v13 = vpack.c.bf16 %v393_v12, %v391_v11 }
  0xda   : > { %v395_v14 = vpop.f32.mrf.mxu1 }
  0xdb   : > { %v396_v29 = vadd.f32 %v395_v14, %v219_v9 }
  0xe2   : > { %v397_v15 = vpop.f32.mrf.mxu1 }
  0xe3   : > { %v398_v28 = vadd.f32 %v397_v15, %v219_v9 }
  0xe5   : > { %v444_v34 = vpack.c.bf16 %v398_v28, %v396_v29 }
  0xea   : > { %v400_v16 = vpop.f32.mrf.mxu1 }
  0xeb   : > { %v401_v24 = vadd.f32 %v400_v16, %v219_v9 }
  0xf2   : > { %v402_v17 = vpop.f32.mrf.mxu1 }
  0xf3   : > { %v403_v23 = vadd.f32 %v402_v17, %v219_v9 }
  0xf5   : > { %v445_v25 = vpack.c.bf16 %v403_v23, %v401_v24 }
  0xfa   : > { %v405_v18 = vpop.f32.mrf.mxu1 }
  0xfb   : > { %v406_v20 = vadd.f32 %v405_v18, %v219_v9 }
 0x102   : > { %v407_v19 = vpop.f32.mrf.mxu1 }
 0x103   : > { %v408_v21 = vadd.f32 %v407_v19, %v219_v9  ;;  %v377_v9 = vadd.f32 %v376_v60, %v1070_v62 }
 0x105   : > { %v446_v22 = vpack.c.bf16 %v408_v21, %v406_v20  ;;  %v442_v12 = vpack.c.bf16 %v379_v10, %v377_v9 }
 0x107   : > { %451 = vmatpush.bf16.xpose.msra.mxu3 %v446_v22 }
 0x10f   : > { %452 = vmatpush.bf16.xpose.msra.mxu3 %v445_v25 }
 0x117   : > { %453 = vmatpush.bf16.xpose.msra.mxu3 %v444_v34 }
 0x11f   : > { %454 = vmatpush.bf16.xpose.msra.mxu3 %v443_v13 }
 0x126   : > { %455 = vmatmul.bf16.vlgmr.msra.gmra.mxu3 %v439_v39 }
 0x136   : > { %460 = vmatmul.bf16.gmra.mxu3 %v440_v2  ;;  %v721_v2 = vor.u32 %v798_v1, %v720_v0 }
 0x138   : > { %415 = vmatpush.bf16.msrb.mxu2 %v721_v2 }
 0x13c   : > { %416 = vmatpush.bf16.msrb.mxu2 %v709_v6 }
 0x146   : > { %465 = vmatmul.bf16.gmra.mxu3 %v441_v7  ;;  %v696_v7 = vld [vmem:[%s1195_s1 + $0x8] sm:$0xf] }
 0x147   : > { %v697_v11 = vor.u32 %v792_v8, %v696_v7 }
 0x149   : > { %417 = vmatpush.bf16.msrb.mxu2 %v697_v11 }
 0x14c   : > { %418 = vmatmul.bf16.vlgmr.msrb.gmra.mxu2 %v998_v35 }
 0x156   : > { %470 = vmatmul.bf16.gmra.mxu3 %v442_v12 }
 0x15c   : > { %423 = vmatmul.bf16.gmra.mxu2 %v994_v33 }
 0x16c   : > { %428 = vmatmul.bf16.gmra.mxu2 %v1034_v49 }
 0x17c   : > { %433 = vmatmul.bf16.gmra.mxu2 %v1058_v59 }
 0x1a9   : > { %v456_v13 = vpop.f32.mrf.mxu3 }
 0x1aa   : > { %v477_v14 = vsel %vm476_vm0, %v456_v13, -inf }
 0x1ab   : > { %478 = vmax.xlane.f32.xlu0 %v477_v14 }
 0x1b1   : > { %v458_v15 = vpop.f32.mrf.mxu3 }
 0x1b2   : > { %v480_v62 = vsel %vm476_vm0, %v458_v15, -inf }
 0x1b3   : > { %481 = vmax.xlane.f32.xlu0 %v480_v62 }
 0x1b9   : > { %v461_v16 = vpop.f32.mrf.mxu3 }
 0x1ba   : > { %v483_v17 = vsel %vm476_vm0, %v461_v16, -inf }
 0x1bb   : > { %484 = vmax.xlane.f32.xlu1 %v483_v17 }
 0x1c1   : > { %v463_v35 = vpop.f32.mrf.mxu3 }
 0x1c2   : > { %v486_v33 = vsel %vm476_vm0, %v463_v35, -inf }
 0x1c3   : > { %487 = vmax.xlane.f32.xlu1 %v486_v33 }
 0x1c9   : > { %v466_v49 = vpop.f32.mrf.mxu3 }
 0x1ca   : > { %v489_v59 = vsel %vm476_vm0, %v466_v49, -inf }
 0x1cb   : > { %490 = vmax.xlane.f32.xlu2 %v489_v59 }
 0x1cf   : > { %v419_v24 = vpop.f32.mrf.mxu2 }
 0x1d1   : > { %v1138_v18 = vpop.f32.mrf.mxu3 }
 0x1d2   : > { %v492_v19 = vsel %vm476_vm0, %v1138_v18, -inf }
 0x1d3   : > { %493 = vmax.xlane.f32.xlu2 %v492_v19 }
 0x1d7   : > { %v421_v25 = vpop.f32.mrf.mxu2 }
 0x1d8   : > { %v422_v14 = vadd.f32 %v421_v25, %v220_v53 }
 0x1d9   : > { %v1142_v20 = vpop.f32.mrf.mxu3 }
 0x1da   : > { %v495_v21 = vsel %vm476_vm0, %v1142_v20, -inf }
 0x1db   : > { %496 = vmax.xlane.f32.xlu0 %v495_v21 }
 0x1df   : > { %v424_v28 = vpop.f32.mrf.mxu2 }
 0x1e0   : > { %v425_v7 = vadd.f32 %v424_v28, %v220_v53 }
 0x1e1   : > { %v1146_v22 = vpop.f32.mrf.mxu3 }
 0x1e2   : > { %v498_v23 = vsel %vm476_vm0, %v1146_v22, -inf }
 0x1e3   : > { %499 = vmax.xlane.f32.xlu1 %v498_v23 }
 0x1e7   : > { %v426_v29 = vpop.f32.mrf.mxu2 }
 0x1e8   : > { %v427_v8 = vadd.f32 %v426_v29, %v220_v53 }
 0x1ef   : > { %v429_v37 = vpop.f32.mrf.mxu2 }
 0x1f0   : > { %v430_v2 = vadd.f32 %v429_v37, %v220_v53 }
 0x1f7   : > { %v431_v43 = vpop.f32.mrf.mxu2 }
 0x1f8   : > { %v432_v3 = vadd.f32 %v431_v43, %v220_v53 }
 0x1fa   : > { %v571_v9 = vpack.c.bf16 %v432_v3, %v430_v2 }
 0x1ff   : > { %v434_v52 = vpop.f32.mrf.mxu2 }
 0x200   : > { %v435_v63 = vadd.f32 %v434_v52, %v220_v53 }
 0x207   : > { %v436_v1 = vpop.f32.mrf.mxu2 }
 0x208   : > { %v437_v4 = vadd.f32 %v436_v1, %v220_v53 }
 0x20a   : > { %v572_v5 = vpack.c.bf16 %v437_v4, %v435_v63 }
 0x20c   : > { %589 = vmatpush.bf16.msrb.mxu0 %v572_v5 }
 0x210   : > { %590 = vmatpush.bf16.msrb.mxu0 %v571_v9 }
 0x21e   : > { %v479_v30 = vpop.xlane.xlu0 %478 }
 0x21f   : > { %v501_v34 = vsub.f32 %v456_v13, %v479_v30  ;;  %v420_v13 = vadd.f32 %v419_v24, %v220_v53 }
 0x221   : > { %v509_v36 = vmul.f32 1.442695, %v501_v34  ;;  %v569_v17 = vpack.c.bf16 %v422_v14, %v420_v13 }
 0x223   : > { %838 = vpow2.f32 %v509_v36 }
 0x226   : > { %v482_v38 = vpop.xlane.xlu0 %481 }
 0x227   : > { %v502_v39 = vsub.f32 %v458_v15, %v482_v38  ;;  %v570_v15 = vpack.c.bf16 %v427_v8, %v425_v7 }
 0x229   : > { %v1150_v40 = vpop.eup %838  ;;  %v511_v41 = vmul.f32 1.442695, %v502_v39  ;;  %591 = vmatpush.bf16.msrb.mxu0 %v570_v15 }
 0x22a   : > { %v525_v42 = vsel %vm476_vm0, %v1150_v40, 0.0 }
 0x22b   : > { %840 = vpow2.f32 %v511_v41  ;;  %526 = vadd.xlane.f32.xlu2 %v525_v42 }
 0x22d   : > { %592 = vmatpush.bf16.msrb.mxu0 %v569_v17 }
 0x22e   : > { %v485_v46 = vpop.xlane.xlu1 %484 }
 0x22f   : > { %v503_v47 = vsub.f32 %v461_v16, %v485_v46 }
 0x231   : > { %v1154_v48 = vpop.eup %840  ;;  %v513_v50 = vmul.f32 1.442695, %v503_v47 }
 0x232   : > { %v528_v51 = vsel %vm476_vm0, %v1154_v48, 0.0 }
 0x233   : > { %842 = vpow2.f32 %v513_v50  ;;  %529 = vadd.xlane.f32.xlu0 %v528_v51 }
 0x236   : > { %v488_v54 = vpop.xlane.xlu1 %487 }
 0x237   : > { %v504_v55 = vsub.f32 %v463_v35, %v488_v54 }
 0x239   : > { %v1159_v56 = vpop.eup %842  ;;  %v515_v60 = vmul.f32 1.442695, %v504_v55 }
 0x23a   : > { %v531_v0 = vsel %vm476_vm0, %v1159_v56, 0.0 }
 0x23b   : > { %844 = vpow2.f32 %v515_v60  ;;  %532 = vadd.xlane.f32.xlu1 %v531_v0 }
 0x23e   : > { %v491_v6 = vpop.xlane.xlu2 %490 }
 0x23f   : > { %v505_v61 = vsub.f32 %v466_v49, %v491_v6 }
 0x241   : > { %v845_v10 = vpop.eup %844  ;;  %v517_v11 = vmul.f32 1.442695, %v505_v61 }
 0x242   : > { %v534_v12 = vsel %vm476_vm0, %v845_v10, 0.0 }
 0x243   : > { %846 = vpow2.f32 %v517_v11  ;;  %535 = vadd.xlane.f32.xlu2 %v534_v12 }
 0x246   : > { %v494_v62 = vpop.xlane.xlu2 %493 }
 0x247   : > { %v506_v16 = vsub.f32 %v1138_v18, %v494_v62 }
 0x249   : > { %v847_v35 = vpop.eup %846  ;;  %v519_v33 = vmul.f32 1.442695, %v506_v16 }
 0x24a   : > { %v537_v49 = vsel %vm476_vm0, %v847_v35, 0.0 }
 0x24b   : > { %848 = vpow2.f32 %v519_v33  ;;  %538 = vadd.xlane.f32.xlu0 %v537_v49 }
 0x24e   : > { %v497_v59 = vpop.xlane.xlu0 %496 }
 0x24f   : > { %v507_v19 = vsub.f32 %v1142_v20, %v497_v59 }
 0x251   : > { %v849_v21 = vpop.eup %848  ;;  %v521_v23 = vmul.f32 1.442695, %v507_v19 }
 0x252   : > { %v540_v24 = vsel %vm476_vm0, %v849_v21, 0.0 }
 0x253   : > { %850 = vpow2.f32 %v521_v23  ;;  %541 = vadd.xlane.f32.xlu1 %v540_v24 }
 0x256   : > { %v500_v25 = vpop.xlane.xlu1 %499 }
 0x257   : > { %v508_v18 = vsub.f32 %v1146_v22, %v500_v25 }
 0x259   : > { %v851_v28 = vpop.eup %850  ;;  %v523_v29 = vmul.f32 1.442695, %v508_v18 }
 0x25a   : > { %v543_v30 = vsel %vm476_vm0, %v851_v28, 0.0 }
 0x25b   : > { %852 = vpow2.f32 %v523_v29  ;;  %544 = vadd.xlane.f32.xlu2 %v543_v30 }
 0x261   : > { %v853_v34 = vpop.eup %852 }
 0x262   : > { %v546_v36 = vsel %vm476_vm0, %v853_v34, 0.0 }
 0x263   : > { %547 = vadd.xlane.f32.xlu0 %v546_v36 }
 0x29e   : > { %v527_v20 = vpop.xlane.xlu2 %526 }
 0x29f   : > { %854 = vrcp.f32 %v527_v20 }
 0x2a5   : > { %v855_v38 = vpop.eup %854 }
 0x2a6   : > { %v530_v37 = vpop.xlane.xlu0 %529  ;;  %v557_v41 = vmul.f32 %v855_v38, %v1150_v40 }
 0x2a7   : > { %856 = vrcp.f32 %v530_v37 }
 0x2ad   : > { %v857_v39 = vpop.eup %856 }
 0x2ae   : > { %v558_v22 = vmul.f32 %v857_v39, %v1154_v48  ;;  %v533_v43 = vpop.xlane.xlu1 %532 }
 0x2af   : > { %858 = vrcp.f32 %v533_v43 }
 0x2b0   : > { %v565_v42 = vpack.c.bf16 %v558_v22, %v557_v41 }
 0x2b2   : > { %782 = vmatmul.msk.bf16.vlgmr.msrb.gmra.mxu0 %vm476_vm0, %v565_v42 }
 0x2b5   : > { %v859_v47 = vpop.eup %858 }
 0x2b6   : > { %v536_v46 = vpop.xlane.xlu2 %535  ;;  %v559_v51 = vmul.f32 %v859_v47, %v1159_v56 }
 0x2b7   : > { %860 = vrcp.f32 %v536_v46 }
 0x2bd   : > { %v861_v50 = vpop.eup %860 }
 0x2be   : > { %v560_v52 = vmul.f32 %v861_v50, %v845_v10  ;;  %v539_v54 = vpop.xlane.xlu0 %538 }
 0x2bf   : > { %862 = vrcp.f32 %v539_v54 }
 0x2c0   : > { %v566_v53 = vpack.c.bf16 %v560_v52, %v559_v51 }
 0x2c2   : > { %783 = vmatmul.msk.bf16.gmra.mxu0 %vm476_vm0, %v566_v53 }
 0x2c5   : > { %v863_v48 = vpop.eup %862 }
 0x2c6   : > { %v542_v40 = vpop.xlane.xlu1 %541  ;;  %v561_v60 = vmul.f32 %v863_v48, %v847_v35 }
 0x2c7   : > { %864 = vrcp.f32 %v542_v40 }
 0x2cd   : > { %v865_v55 = vpop.eup %864 }
 0x2ce   : > { %v562_v63 = vmul.f32 %v865_v55, %v849_v21  ;;  %v545_v1 = vpop.xlane.xlu2 %544 }
 0x2cf   : > { %866 = vrcp.f32 %v545_v1 }
 0x2d0   : > { %v567_v0 = vpack.c.bf16 %v562_v63, %v561_v60 }
 0x2d2   : > { %784 = vmatmul.msk.bf16.gmra.mxu0 %vm476_vm0, %v567_v0 }
 0x2d5   : > { %v867_v56 = vpop.eup %866 }
 0x2d6   : > { %v548_v2 = vpop.xlane.xlu0 %547  ;;  %v563_v4 = vmul.f32 %v867_v56, %v851_v28 }
 0x2d7   : > { %868 = vrcp.f32 %v548_v2 }
 0x2dd   : > { %v869_v3 = vpop.eup %868 }
 0x2de   : > { %v564_v5 = vmul.f32 %v869_v3, %v853_v34 }
 0x2e0   : > { %v568_v6 = vpack.c.bf16 %v564_v5, %v563_v4 }
 0x2e2   : > { %785 = vmatmul.msk.bf16.gmra.mxu0 %vm476_vm0, %v568_v6 }
 0x32f   : > { %v594_v7 = vpop.f32.mrf.mxu0 }
 0x330   : > { %v595_v8 = vadd.f32 %v594_v7, %v987_v31 }
 0x332   : > { %614 = vst [vmem:[%s170_s21] sm:$0xff] %v595_v8 }
 0x337   : > { %v596_v61 = vpop.f32.mrf.mxu0 }
 0x338   : > { %v597_v9 = vadd.f32 %v596_v61, %v990_v32 }
 0x33a   : > { %615 = vst [vmem:[%s170_s21 + $0x8] sm:$0xff] %v597_v9 }
 0x33f   : > { %v599_v10 = vpop.f32.mrf.mxu0 }
 0x340   : > { %v600_v11 = vadd.f32 %v599_v10, %v975_v26 }
 0x342   : > { %616 = vst [vmem:[%s170_s21 + $0x10] sm:$0xff] %v600_v11 }
 0x347   : > { %v601_v12 = vpop.f32.mrf.mxu0 }
 0x348   : > { %v602_v13 = vadd.f32 %v601_v12, %v978_v27 }
 0x34a   : > { %617 = vst [vmem:[%s170_s21 + $0x18] sm:$0xff] %v602_v13 }
 0x34f   : > { %v604_v14 = vpop.f32.mrf.mxu0 }
 0x350   : > { %v605_v15 = vadd.f32 %v604_v14, %v1021_v44 }
 0x352   : > { %618 = vst [vmem:[%s170_s21 + $0x20] sm:$0xff] %v605_v15 }
 0x357   : > { %v606_v62 = vpop.f32.mrf.mxu0 }
 0x358   : > { %v607_v31 = vadd.f32 %v606_v62, %v1024_v45 }
 0x35a   : > { %619 = vst [vmem:[%s170_s21 + $0x28] sm:$0xff] %v607_v31 }
 0x35f   : > { %v609_v16 = vpop.f32.mrf.mxu0 }
 0x360   : > { %v610_v32 = vadd.f32 %v609_v16, %v1051_v57 }
 0x362   : > { %620 = vst [vmem:[%s170_s21 + $0x30] sm:$0xff] %v610_v32 }
 0x367   : > { %v611_v17 = vpop.f32.mrf.mxu0 }
 0x368   : > { %v612_v26 = vadd.f32 %v611_v17, %v1054_v58 }
 0x36a   : > { %621 = vst [vmem:[%s170_s21 + $0x38] sm:$0xff] %v612_v26 }
 0x36b PF: > { %s13_s12 = sadd.s32 1, %s876_s12  }
 0x36c   : > { %p10_p4 = scmp.ge.s32.totalorder %s13_s12, 4  }
 0x36e   :  { %12 = sbr.rel (!%p10_p4) target bundleno = 1 (0x1), region = 62 }

// kernel: generator_forward.14
= control target key start
LH: loop header
LB: loop body
LE: loop exit
PB: predicated region body
PF: predicated region fallthrough
CT: control target
= control target key end

     0   :  { %vm86_vm0 = vcmask 130048   ;;  %s265_s0 = inlined_call_operand.vmem [shape: f32[128,16], index: 0, kind: input, shape index: {}, may-alias: {0,3}]   ;;  %s266_s1 = inlined_call_operand.vmem [shape: f32[1,16], index: 1, kind: input, shape index: {}]   ;;  %s267_s2 = inlined_call_operand.vmem [shape: f32[1,16], index: 2, kind: input, shape index: {}]   ;;  %s268_s3 = inlined_call_operand.vmem [shape: f32[128,16], index: 3, kind: output, shape index: {}, may-alias: {0,3}]  }
   0x1   :  { %v14_v0 = vld [vmem:[%s265_s0] sm:$0xff]  ;;  %v15_v3 = vld [vmem:[%s265_s0 + $0x8] sm:$0xff]  ;;  %v16_v6 = vld [vmem:[%s265_s0 + $0x10] sm:$0xff] }
   0x2   :  { %v107_v1 = vld [vmem:[%s266_s1] ss:$0 sm:$0xff]  ;;  %v17_v7 = vld [vmem:[%s265_s0 + $0x18] sm:$0xff]  ;;  %v19_v12 = vld [vmem:[%s265_s0 + $0x28] sm:$0xff] }
   0x3   :  { %v138_v2 = vld [vmem:[%s267_s2] ss:$0 sm:$0xff]  ;;  %v34_v4 = vmul.f32 %v107_v1, %v14_v0  ;;  %v35_v5 = vmul.f32 %v107_v1, %v15_v3  ;;  %v36_v9 = vmul.f32 %v107_v1, %v16_v6  ;;  %v37_v10 = vmul.f32 %v107_v1, %v17_v7  ;;  %v20_v13 = vld [vmem:[%s265_s0 + $0x30] sm:$0xff]  ;;  %v21_v14 = vld [vmem:[%s265_s0 + $0x38] sm:$0xff] }
   0x4   :  { %v18_v8 = vld [vmem:[%s265_s0 + $0x20] sm:$0xff]  ;;  %v39_v17 = vmul.f32 %v107_v1, %v19_v12  ;;  %v40_v18 = vmul.f32 %v107_v1, %v20_v13  ;;  %v41_v22 = vmul.f32 %v107_v1, %v21_v14  ;;  %v23_v24 = vld [vmem:[%s265_s0 + $0x48] sm:$0xff]  ;;  %v24_v29 = vld [vmem:[%s265_s0 + $0x50] sm:$0xff] }
   0x5   :  { %v38_v11 = vmul.f32 %v107_v1, %v18_v8  ;;  %v54_v15 = vadd.f32 %v138_v2, %v34_v4  ;;  %v55_v16 = vadd.f32 %v138_v2, %v35_v5  ;;  %v56_v19 = vadd.f32 %v138_v2, %v36_v9  ;;  %v22_v23 = vld [vmem:[%s265_s0 + $0x40] sm:$0xff]  ;;  %v25_v30 = vld [vmem:[%s265_s0 + $0x58] sm:$0xff]  ;;  %v27_v35 = vld [vmem:[%s265_s0 + $0x68] sm:$0xff] }
   0x6   :  { %v57_v20 = vadd.f32 %v138_v2, %v37_v10  ;;  %v59_v27 = vadd.f32 %v138_v2, %v39_v17  ;;  %v60_v28 = vadd.f32 %v138_v2, %v40_v18  ;;  %v26_v31 = vld [vmem:[%s265_s0 + $0x60] sm:$0xff]  ;;  %v61_v34 = vadd.f32 %v138_v2, %v41_v22  ;;  %v28_v36 = vld [vmem:[%s265_s0 + $0x70] sm:$0xff] }
   0x7   :  { %v58_v21 = vadd.f32 %v138_v2, %v38_v11  ;;  %v70_v25 = vmax.f32 %v54_v15, 0.0  ;;  %v71_v26 = vmax.f32 %v55_v16, 0.0  ;;  %v72_v32 = vmax.f32 %v56_v19, 0.0 }
   0x8   :  { %v73_v33 = vmax.f32 %v57_v20, 0.0  ;;  %v75_v38 = vmax.f32 %v59_v27, 0.0  ;;  %v42_v39 = vmul.f32 %v107_v1, %v22_v23  ;;  %v43_v40 = vmul.f32 %v107_v1, %v23_v24 }
   0x9   :  { %87 = vst.msk [vmem:[%s268_s3] sm:$0xff] %vm86_vm0, %v70_v25  ;;  %v74_v37 = vmax.f32 %v58_v21, 0.0  ;;  %v76_v42 = vmax.f32 %v60_v28, 0.0  ;;  %v44_v43 = vmul.f32 %v107_v1, %v24_v29  ;;  %v45_v44 = vmul.f32 %v107_v1, %v25_v30 }
   0xa   :  { %v46_v45 = vmul.f32 %v107_v1, %v26_v31  ;;  %v62_v46 = vadd.f32 %v138_v2, %v42_v39  ;;  %v63_v47 = vadd.f32 %v138_v2, %v43_v40  ;;  %v47_v48 = vmul.f32 %v107_v1, %v27_v35 }
   0xb   :  { %v48_v49 = vmul.f32 %v107_v1, %v28_v36  ;;  %v77_v50 = vmax.f32 %v61_v34, 0.0  ;;  %v64_v51 = vadd.f32 %v138_v2, %v44_v43  ;;  %v65_v52 = vadd.f32 %v138_v2, %v45_v44 }
   0xc   :  { %v78_v54 = vmax.f32 %v62_v46, 0.0  ;;  %v66_v55 = vadd.f32 %v138_v2, %v46_v45  ;;  %v79_v56 = vmax.f32 %v63_v47, 0.0  ;;  %v67_v57 = vadd.f32 %v138_v2, %v47_v48 }
   0xd   :  { %v80_v58 = vmax.f32 %v64_v51, 0.0  ;;  %v68_v59 = vadd.f32 %v138_v2, %v48_v49  ;;  %v81_v60 = vmax.f32 %v65_v52, 0.0 }
   0xe   :  { %v82_v62 = vmax.f32 %v66_v55, 0.0  ;;  %v83_v63 = vmax.f32 %v67_v57, 0.0 }
   0xf   :  { %v84_v0 = vmax.f32 %v68_v59, 0.0 }
  0x10   :  { %v29_v41 = vld [vmem:[%s265_s0 + $0x78] sm:$0xff] }
  0x11   :  { %88 = vst.msk [vmem:[%s268_s3 + $0x8] sm:$0xff] %vm86_vm0, %v71_v26  ;;  %v49_v53 = vmul.f32 %v107_v1, %v29_v41 }
  0x12   :  { %89 = vst.msk [vmem:[%s268_s3 + $0x10] sm:$0xff] %vm86_vm0, %v72_v32 }
  0x13   :  { %90 = vst.msk [vmem:[%s268_s3 + $0x18] sm:$0xff] %vm86_vm0, %v73_v33  ;;  %v69_v61 = vadd.f32 %v138_v2, %v49_v53 }
  0x14   :  { %91 = vst.msk [vmem:[%s268_s3 + $0x20] sm:$0xff] %vm86_vm0, %v74_v37 }
  0x15   :  { %92 = vst.msk [vmem:[%s268_s3 + $0x28] sm:$0xff] %vm86_vm0, %v75_v38  ;;  %v85_v1 = vmax.f32 %v69_v61, 0.0 }
  0x16   :  { %93 = vst.msk [vmem:[%s268_s3 + $0x30] sm:$0xff] %vm86_vm0, %v76_v42 }
  0x17   :  { %94 = vst.msk [vmem:[%s268_s3 + $0x38] sm:$0xff] %vm86_vm0, %v77_v50 }
  0x18   :  { %95 = vst.msk [vmem:[%s268_s3 + $0x40] sm:$0xff] %vm86_vm0, %v78_v54 }
  0x19   :  { %96 = vst.msk [vmem:[%s268_s3 + $0x48] sm:$0xff] %vm86_vm0, %v79_v56 }
  0x1a   :  { %97 = vst.msk [vmem:[%s268_s3 + $0x50] sm:$0xff] %vm86_vm0, %v80_v58 }
  0x1b   :  { %98 = vst.msk [vmem:[%s268_s3 + $0x58] sm:$0xff] %vm86_vm0, %v81_v60 }
  0x1c   :  { %99 = vst.msk [vmem:[%s268_s3 + $0x60] sm:$0xff] %vm86_vm0, %v82_v62 }
  0x1d   :  { %100 = vst.msk [vmem:[%s268_s3 + $0x68] sm:$0xff] %vm86_vm0, %v83_v63 }
  0x1e   :  { %101 = vst.msk [vmem:[%s268_s3 + $0x70] sm:$0xff] %vm86_vm0, %v84_v0 }
  0x1f   :  { %102 = vst.msk [vmem:[%s268_s3 + $0x78] sm:$0xff] %vm86_vm0, %v85_v1 }

// kernel: tile.38
= control target key start
LH: loop header
LB: loop body
LE: loop exit
PB: predicated region body
PF: predicated region fallthrough
CT: control target
= control target key end

     0   :  { %s22_s0 = inlined_call_operand.vmem [shape: f32[32], index: 0, kind: input, shape index: {}]   ;;  %s23_s1 = inlined_call_operand.vmem [shape: f32[4,32], index: 1, kind: output, shape index: {}]  }
   0x1   :  { %v4_v0 = vld [vmem:[%s22_s0] ss:$0 sm:$0xff] }
   0x2   :  { %5 = vst [vmem:[%s23_s1] sm:$0xf] %v4_v0 }

// kernel: generator_forward.13
= control target key start
LH: loop header
LB: loop body
LE: loop exit
PB: predicated region body
PF: predicated region fallthrough
CT: control target
= control target key end

     0   :  { %vm174_vm0 = vcmask 130048   ;;  %vm403_vm1 = vcmask 1040384   ;;  %vm405_vm2 = vcmask 123904   ;;  %s831_s1 = inlined_call_operand.vmem [shape: bf16[144,16], index: 1, kind: input, shape index: {}]   ;;  %s832_s0 = inlined_call_operand.vmem [shape: bf16[128,144], index: 0, kind: input, shape index: {}]   ;;  %s833_s2 = inlined_call_operand.vmem [shape: f32[128,16], index: 2, kind: output, shape index: {0}]   ;;  %s834_s3 = inlined_call_operand.vmem [shape: f32[1,2,16], index: 3, kind: output, shape index: {1}]  }
   0x1   :  { %v546_v0 = vld [vmem:[%s831_s1 + $0x38] sm:$0xff]  ;;  %v547_v1 = vld [vmem:[%s831_s1 + $0x40] sm:$0xff]  ;;  %v419_v3 = vld [vmem:[%s832_s0 + $0x8] sm:$0xf0] }
   0x2   :  { %v523_v2 = vld [vmem:[%s832_s0 + $0x4] sm:$0xf]  ;;  %199 = vmatpush.bf16.msra.mxu0 %v546_v0  ;;  %255 = vmatpush.bf16.msra.mxu1 %v547_v1  ;;  %v545_v5 = vld [vmem:[%s831_s1 + $0x30] sm:$0xff]  ;;  %v544_v6 = vld [vmem:[%s831_s1 + $0x28] sm:$0xff] }
   0x3   :  { %v422_v4 = vor.u32 %v523_v2, %v419_v3  ;;  %548 = vmatpush.bf16.msra.mxu2 %v546_v0  ;;  %556 = vmatpush.bf16.msra.mxu3 %v547_v1  ;;  %v543_v7 = vld [vmem:[%s831_s1 + $0x20] sm:$0xff]  ;;  %v542_v8 = vld [vmem:[%s831_s1 + $0x18] sm:$0xff]  ;;  %v525_v9 = vld [vmem:[%s832_s0 + $0x14] sm:$0xf] }
   0x4   :  { %v427_v10 = vld [vmem:[%s832_s0 + $0x18] sm:$0xf0]  ;;  %v533_v11 = vld [vmem:[%s832_s0 + $0x54] sm:$0xf]  ;;  %v540_v16 = vld [vmem:[%s831_s1 + $0x8] sm:$0xff] }
   0x5   :  { %515 = vmatmul.msk.bf16.vlgmr.msra.gmra.mxu1 %vm174_vm0, %v422_v4  ;;  %v430_v12 = vor.u32 %v525_v9, %v427_v10  ;;  %v459_v13 = vld [vmem:[%s832_s0 + $0x58] sm:$0xf0]  ;;  %v541_v14 = vld [vmem:[%s831_s1 + $0x10] sm:$0xff]  ;;  %v539_v17 = vld [vmem:[%s831_s1] sm:$0xff] }
   0x6   :  { %200 = vmatpush.bf16.msra.mxu0 %v545_v5  ;;  %v462_v15 = vor.u32 %v533_v11, %v459_v13  ;;  %v417_v18 = vld [vmem:[%s832_s0] sm:$0xf]  ;;  %v524_v19 = vld [vmem:[%s832_s0 + $0x4] sm:$0xf0]  ;;  %v527_v24 = vld [vmem:[%s832_s0 + $0x24] sm:$0xf] }
   0x7   :  { %549 = vmatpush.bf16.msra.mxu2 %v545_v5  ;;  %v449_v20 = vld [vmem:[%s832_s0 + $0x40] sm:$0xf]  ;;  %v532_v21 = vld [vmem:[%s832_s0 + $0x44] sm:$0xf0]  ;;  %v418_v22 = vor.u32 %v524_v19, %v417_v18  ;;  %v435_v25 = vld [vmem:[%s832_s0 + $0x28] sm:$0xf0] }
   0x8   :  { %520 = vmatmul.msk.bf16.vlgmr.msra.gmra.mxu3 %vm174_vm0, %v462_v15  ;;  %v450_v23 = vor.u32 %v532_v21, %v449_v20  ;;  %v535_v26 = vld [vmem:[%s832_s0 + $0x64] sm:$0xf]  ;;  %v438_v27 = vor.u32 %v527_v24, %v435_v25  ;;  %v467_v28 = vld [vmem:[%s832_s0 + $0x68] sm:$0xf0]  ;;  %v425_v30 = vld [vmem:[%s832_s0 + $0x10] sm:$0xf] }
   0x9   :  { %v470_v29 = vor.u32 %v535_v26, %v467_v28  ;;  %v526_v31 = vld [vmem:[%s832_s0 + $0x14] sm:$0xf0]  ;;  %v457_v32 = vld [vmem:[%s832_s0 + $0x50] sm:$0xf]  ;;  %v529_v36 = vld [vmem:[%s832_s0 + $0x34] sm:$0xf] }
   0xa   :  { %201 = vmatpush.bf16.msra.mxu0 %v544_v6  ;;  %v534_v33 = vld [vmem:[%s832_s0 + $0x54] sm:$0xf0]  ;;  %v426_v34 = vor.u32 %v526_v31, %v425_v30  ;;  %v443_v37 = vld [vmem:[%s832_s0 + $0x38] sm:$0xf0]  ;;  %v537_v38 = vld [vmem:[%s832_s0 + $0x74] sm:$0xf] }
   0xb   :  { %550 = vmatpush.bf16.msra.mxu2 %v544_v6  ;;  %v458_v35 = vor.u32 %v534_v33, %v457_v32  ;;  %v446_v39 = vor.u32 %v529_v36, %v443_v37  ;;  %v475_v40 = vld [vmem:[%s832_s0 + $0x78] sm:$0xf0]  ;;  %v433_v42 = vld [vmem:[%s832_s0 + $0x20] sm:$0xf]  ;;  %v528_v43 = vld [vmem:[%s832_s0 + $0x24] sm:$0xf0] }
   0xc   :  { %v478_v41 = vor.u32 %v537_v38, %v475_v40  ;;  %v465_v44 = vld [vmem:[%s832_s0 + $0x60] sm:$0xf]  ;;  %v536_v45 = vld [vmem:[%s832_s0 + $0x64] sm:$0xf0]  ;;  %v434_v46 = vor.u32 %v528_v43, %v433_v42  ;;  %v531_v48 = vld [vmem:[%s832_s0 + $0x44] sm:$0xf] }
   0xd   :  { %v466_v47 = vor.u32 %v536_v45, %v465_v44  ;;  %v451_v49 = vld [vmem:[%s832_s0 + $0x48] sm:$0xf0]  ;;  %v441_v51 = vld [vmem:[%s832_s0 + $0x30] sm:$0xf]  ;;  %v530_v52 = vld [vmem:[%s832_s0 + $0x34] sm:$0xf0] }
   0xe   :  { %202 = vmatpush.bf16.msra.mxu0 %v543_v7  ;;  %v454_v50 = vor.u32 %v531_v48, %v451_v49  ;;  %v473_v53 = vld [vmem:[%s832_s0 + $0x70] sm:$0xf]  ;;  %v538_v54 = vld [vmem:[%s832_s0 + $0x74] sm:$0xf0]  ;;  %v442_v55 = vor.u32 %v530_v52, %v441_v51 }
   0xf   :  { %551 = vmatpush.bf16.msra.mxu2 %v543_v7  ;;  %v474_v56 = vor.u32 %v538_v54, %v473_v53 }
  0x12   :  { %203 = vmatpush.bf16.msra.mxu0 %v542_v8 }
  0x13   :  { %552 = vmatpush.bf16.msra.mxu2 %v542_v8 }
  0x15   :  { %516 = vmatmul.msk.bf16.gmra.mxu1 %vm174_vm0, %v430_v12 }
  0x16   :  { %204 = vmatpush.bf16.msra.mxu0 %v541_v14 }
  0x17   :  { %553 = vmatpush.bf16.msra.mxu2 %v541_v14 }
  0x18   :  { %521 = vmatmul.msk.bf16.gmra.mxu3 %vm174_vm0, %v470_v29 }
  0x1a   :  { %205 = vmatpush.bf16.msra.mxu0 %v540_v16 }
  0x1b   :  { %554 = vmatpush.bf16.msra.mxu2 %v540_v16 }
  0x1e   :  { %206 = vmatpush.bf16.msra.mxu0 %v539_v17 }
  0x1f   :  { %555 = vmatpush.bf16.msra.mxu2 %v539_v17 }
  0x21   :  { %207 = vmatmul.bf16.vlgmr.msra.gmra.mxu0 %v418_v22 }
  0x22   :  { %227 = vmatmul.bf16.vlgmr.msra.gmra.mxu2 %v450_v23 }
  0x25   :  { %517 = vmatmul.msk.bf16.gmra.mxu1 %vm174_vm0, %v438_v27 }
  0x28   :  { %522 = vmatmul.msk.bf16.gmra.mxu3 %vm174_vm0, %v478_v41 }
  0x31   :  { %212 = vmatmul.bf16.gmra.mxu0 %v426_v34 }
  0x32   :  { %232 = vmatmul.bf16.gmra.mxu2 %v458_v35 }
  0x35   :  { %518 = vmatmul.msk.bf16.gmra.mxu1 %vm174_vm0, %v446_v39 }
  0x41   :  { %217 = vmatmul.bf16.gmra.mxu0 %v434_v46 }
  0x42   :  { %237 = vmatmul.bf16.gmra.mxu2 %v466_v47 }
  0x45   :  { %519 = vmatmul.msk.bf16.gmra.mxu1 %vm174_vm0, %v454_v50 }
  0x51   :  { %222 = vmatmul.bf16.gmra.mxu0 %v442_v55 }
  0x52   :  { %242 = vmatmul.bf16.gmra.mxu2 %v474_v56 }
  0x82   :  { %v257_v57 = vpop.f32.mrf.mxu1 }
  0x8a   :  { %v259_v58 = vpop.f32.mrf.mxu1 }
  0x8b   :  { %v282_v3 = vpop.f32.mrf.mxu3 }
  0x92   :  { %v262_v59 = vpop.f32.mrf.mxu1 }
  0x93   :  { %v284_v9 = vpop.f32.mrf.mxu3 }
  0x9a   :  { %v264_v60 = vpop.f32.mrf.mxu1 }
  0x9b   :  { %v287_v16 = vpop.f32.mrf.mxu3 }
  0x9e   :  { %v208_v61 = vpop.f32.mrf.mxu0 }
  0x9f   :  { %v258_v62 = vadd.f32 %v257_v57, %v208_v61 }
  0xa1   :  { %297 = vst.msk [vmem:[%s833_s2] sm:$0xff] %vm174_vm0, %v258_v62  ;;  %v350_v28 = vmul.f32 %v258_v62, %v258_v62  ;;  %v313_v33 = vsel %vm174_vm0, %v258_v62, 0.0 }
  0xa2   :  { %v267_v63 = vpop.f32.mrf.mxu1 }
  0xa3   :  { %v289_v26 = vpop.f32.mrf.mxu3  ;;  %v366_v38 = vsel %vm174_vm0, %v350_v28, 0.0 }
  0xa5   :  { %v228_v0 = vpop.f32.mrf.mxu2 }
  0xa6   :  { %v210_v1 = vpop.f32.mrf.mxu0 }
  0xa7   :  { %v260_v2 = vadd.f32 %v259_v58, %v210_v1 }
  0xa9   :  { %298 = vst.msk [vmem:[%s833_s2 + $0x8] sm:$0xff] %vm174_vm0, %v260_v2  ;;  %v351_v27 = vmul.f32 %v260_v2, %v260_v2  ;;  %v314_v30 = vsel %vm174_vm0, %v260_v2, 0.0 }
  0xaa   :  { %v269_v4 = vpop.f32.mrf.mxu1  ;;  %v315_v39 = vadd.f32 %v314_v30, %v313_v33 }
  0xab   :  { %v367_v34 = vsel %vm174_vm0, %v351_v27, 0.0  ;;  %v292_v51 = vpop.f32.mrf.mxu3 }
  0xac   :  { %v368_v46 = vadd.f32 %v367_v34, %v366_v38 }
  0xad   :  { %v230_v5 = vpop.f32.mrf.mxu2 }
  0xae   :  { %v213_v6 = vpop.f32.mrf.mxu0 }
  0xaf   :  { %v263_v7 = vadd.f32 %v262_v59, %v213_v6 }
  0xb1   :  { %299 = vst.msk [vmem:[%s833_s2 + $0x10] sm:$0xff] %vm174_vm0, %v263_v7  ;;  %v352_v31 = vmul.f32 %v263_v7, %v263_v7  ;;  %v316_v35 = vsel %vm174_vm0, %v263_v7, 0.0 }
  0xb2   :  { %v272_v8 = vpop.f32.mrf.mxu1  ;;  %v317_v47 = vadd.f32 %v316_v35, %v315_v39 }
  0xb3   :  { %v369_v42 = vsel %vm174_vm0, %v352_v31, 0.0 }
  0xb4   :  { %v370_v52 = vadd.f32 %v369_v42, %v368_v46 }
  0xb5   :  { %v233_v10 = vpop.f32.mrf.mxu2 }
  0xb6   :  { %v215_v11 = vpop.f32.mrf.mxu0  ;;  %v720_v12 = vadd.f32 %v282_v3, %v233_v10 }
  0xb7   :  { %v265_v13 = vadd.f32 %v264_v60, %v215_v11 }
  0xb8   :  { %307 = vst.msk [vmem:[%s833_s2 + $0x50] sm:$0xff] %vm174_vm0, %v720_v12 }
  0xb9   :  { %300 = vst.msk [vmem:[%s833_s2 + $0x18] sm:$0xff] %vm174_vm0, %v265_v13  ;;  %v353_v36 = vmul.f32 %v265_v13, %v265_v13  ;;  %v318_v43 = vsel %vm174_vm0, %v265_v13, 0.0 }
  0xba   :  { %v274_v14 = vpop.f32.mrf.mxu1  ;;  %v319_v53 = vadd.f32 %v318_v43, %v317_v47 }
  0xbb   :  { %v371_v48 = vsel %vm174_vm0, %v353_v36, 0.0 }
  0xbc   :  { %v372_v57 = vadd.f32 %v371_v48, %v370_v52 }
  0xbd   :  { %v235_v15 = vpop.f32.mrf.mxu2 }
  0xbe   :  { %v218_v17 = vpop.f32.mrf.mxu0  ;;  %v731_v18 = vadd.f32 %v284_v9, %v235_v15  ;;  %v294_v15 = vpop.f32.mrf.mxu3 }
  0xbf   :  { %v268_v19 = vadd.f32 %v267_v63, %v218_v17 }
  0xc0   :  { %308 = vst.msk [vmem:[%s833_s2 + $0x58] sm:$0xff] %vm174_vm0, %v731_v18  ;;  %v361_v28 = vmul.f32 %v731_v18, %v731_v18  ;;  %v334_v33 = vsel %vm174_vm0, %v731_v18, 0.0 }
  0xc1   :  { %301 = vst.msk [vmem:[%s833_s2 + $0x20] sm:$0xff] %vm174_vm0, %v268_v19  ;;  %v354_v44 = vmul.f32 %v268_v19, %v268_v19  ;;  %v320_v49 = vsel %vm174_vm0, %v268_v19, 0.0  ;;  %v360_v19 = vmul.f32 %v720_v12, %v720_v12 }
  0xc2   :  { %v277_v20 = vpop.f32.mrf.mxu1  ;;  %v321_v58 = vadd.f32 %v320_v49, %v319_v53  ;;  %v387_v36 = vsel %vm174_vm0, %v361_v28, 0.0 }
  0xc3   :  { %v278_v21 = vadd.f32 %v277_v20, %v228_v0  ;;  %v373_v54 = vsel %vm174_vm0, %v354_v44, 0.0 }
  0xc4   :  { %v374_v62 = vadd.f32 %v373_v54, %v372_v57 }
  0xc5   :  { %305 = vst.msk [vmem:[%s833_s2 + $0x40] sm:$0xff] %vm174_vm0, %v278_v21  ;;  %v238_v22 = vpop.f32.mrf.mxu2  ;;  %v358_v6 = vmul.f32 %v278_v21, %v278_v21  ;;  %v328_v11 = vsel %vm174_vm0, %v278_v21, 0.0  ;;  %v332_v21 = vsel %vm174_vm0, %v720_v12, 0.0 }
  0xc6   :  { %v220_v23 = vpop.f32.mrf.mxu0  ;;  %v746_v24 = vadd.f32 %v287_v16, %v238_v22 }
  0xc7   :  { %v270_v25 = vadd.f32 %v269_v4, %v220_v23  ;;  %v381_v20 = vsel %vm174_vm0, %v358_v6, 0.0 }
  0xc8   :  { %309 = vst.msk [vmem:[%s833_s2 + $0x60] sm:$0xff] %vm174_vm0, %v746_v24  ;;  %v362_v12 = vmul.f32 %v746_v24, %v746_v24 }
  0xc9   :  { %302 = vst.msk [vmem:[%s833_s2 + $0x28] sm:$0xff] %vm174_vm0, %v270_v25  ;;  %v355_v50 = vmul.f32 %v270_v25, %v270_v25  ;;  %v322_v55 = vsel %vm174_vm0, %v270_v25, 0.0 }
  0xca   :  { %v279_v29 = vpop.f32.mrf.mxu1  ;;  %v323_v63 = vadd.f32 %v322_v55, %v321_v58  ;;  %v389_v42 = vsel %vm174_vm0, %v362_v12, 0.0 }
  0xcb   :  { %v280_v32 = vadd.f32 %v279_v29, %v230_v5  ;;  %v375_v59 = vsel %vm174_vm0, %v355_v50, 0.0 }
  0xcc   :  { %v376_v4 = vadd.f32 %v375_v59, %v374_v62 }
  0xcd   :  { %306 = vst.msk [vmem:[%s833_s2 + $0x48] sm:$0xff] %vm174_vm0, %v280_v32  ;;  %v240_v37 = vpop.f32.mrf.mxu2  ;;  %v359_v13 = vmul.f32 %v280_v32, %v280_v32  ;;  %v330_v22 = vsel %vm174_vm0, %v280_v32, 0.0  ;;  %v385_v32 = vsel %vm174_vm0, %v360_v19, 0.0 }
  0xce   :  { %v223_v40 = vpop.f32.mrf.mxu0  ;;  %v766_v41 = vadd.f32 %v289_v26, %v240_v37  ;;  %v336_v37 = vsel %vm174_vm0, %v746_v24, 0.0 }
  0xcf   :  { %v273_v45 = vadd.f32 %v272_v8, %v223_v40  ;;  %v383_v29 = vsel %vm174_vm0, %v359_v13, 0.0 }
  0xd0   :  { %310 = vst.msk [vmem:[%s833_s2 + $0x68] sm:$0xff] %vm174_vm0, %v766_v41  ;;  %v363_v38 = vmul.f32 %v766_v41, %v766_v41  ;;  %v338_v18 = vsel %vm174_vm0, %v766_v41, 0.0 }
  0xd1   :  { %303 = vst.msk [vmem:[%s833_s2 + $0x30] sm:$0xff] %vm174_vm0, %v273_v45  ;;  %v356_v56 = vmul.f32 %v273_v45, %v273_v45  ;;  %v324_v60 = vsel %vm174_vm0, %v273_v45, 0.0 }
  0xd2   :  { %v325_v5 = vadd.f32 %v324_v60, %v323_v63  ;;  %v391_v46 = vsel %vm174_vm0, %v363_v38, 0.0 }
  0xd3   :  { %v377_v2 = vsel %vm174_vm0, %v356_v56, 0.0 }
  0xd4   :  { %v378_v9 = vadd.f32 %v377_v2, %v376_v4 }
  0xd5   :  { %v243_v61 = vpop.f32.mrf.mxu2 }
  0xd6   :  { %v225_v0 = vpop.f32.mrf.mxu0  ;;  %v293_v1 = vadd.f32 %v292_v51, %v243_v61 }
  0xd7   :  { %v275_v3 = vadd.f32 %v274_v14, %v225_v0 }
  0xd8   :  { %311 = vst.msk [vmem:[%s833_s2 + $0x70] sm:$0xff] %vm174_vm0, %v293_v1  ;;  %v364_v43 = vmul.f32 %v293_v1, %v293_v1  ;;  %v340_v47 = vsel %vm174_vm0, %v293_v1, 0.0 }
  0xd9   :  { %304 = vst.msk [vmem:[%s833_s2 + $0x38] sm:$0xff] %vm174_vm0, %v275_v3  ;;  %v326_v7 = vsel %vm174_vm0, %v275_v3, 0.0  ;;  %v357_v8 = vmul.f32 %v275_v3, %v275_v3 }
  0xda   :  { %v327_v10 = vadd.f32 %v326_v7, %v325_v5  ;;  %v393_v50 = vsel %vm174_vm0, %v364_v43, 0.0 }
  0xdb   :  { %v379_v14 = vsel %vm174_vm0, %v357_v8, 0.0 }
  0xdc   :  { %v329_v16 = vadd.f32 %v328_v11, %v327_v10  ;;  %v380_v17 = vadd.f32 %v379_v14, %v378_v9 }
  0xdd   :  { %v245_v23 = vpop.f32.mrf.mxu2 }
  0xde   :  { %v331_v25 = vadd.f32 %v330_v22, %v329_v16  ;;  %v382_v26 = vadd.f32 %v381_v20, %v380_v17  ;;  %v295_v27 = vadd.f32 %v294_v15, %v245_v23 }
  0xe0   :  { %v333_v30 = vadd.f32 %v332_v21, %v331_v25  ;;  %v384_v31 = vadd.f32 %v383_v29, %v382_v26  ;;  %312 = vst.msk [vmem:[%s833_s2 + $0x78] sm:$0xff] %vm174_vm0, %v295_v27  ;;  %v365_v48 = vmul.f32 %v295_v27, %v295_v27  ;;  %v342_v51 = vsel %vm174_vm0, %v295_v27, 0.0 }
  0xe2   :  { %v386_v34 = vadd.f32 %v385_v32, %v384_v31  ;;  %v335_v35 = vadd.f32 %v334_v33, %v333_v30  ;;  %v395_v54 = vsel %vm174_vm0, %v365_v48, 0.0 }
  0xe4   :  { %v337_v39 = vadd.f32 %v336_v37, %v335_v35  ;;  %v388_v40 = vadd.f32 %v387_v36, %v386_v34 }
  0xe6   :  { %v339_v44 = vadd.f32 %v338_v18, %v337_v39  ;;  %v390_v45 = vadd.f32 %v389_v42, %v388_v40 }
  0xe8   :  { %v341_v49 = vadd.f32 %v340_v47, %v339_v44  ;;  %v392_v24 = vadd.f32 %v391_v46, %v390_v45 }
  0xea   :  { %v394_v52 = vadd.f32 %v393_v50, %v392_v24  ;;  %v343_v53 = vadd.f32 %v342_v51, %v341_v49 }
  0xec   :  { %v344_v55 = vrot.slane %v343_v53, 4  ;;  %v396_v41 = vadd.f32 %v395_v54, %v394_v52 }
  0xee   :  { %v345_v56 = vadd.f32 %v344_v55, %v343_v53  ;;  %v397_v57 = vrot.slane %v396_v41, 4 }
  0xf0   :  { %v346_v58 = vrot.slane %v345_v56, 2  ;;  %v398_v59 = vadd.f32 %v397_v57, %v396_v41 }
  0xf2   :  { %v347_v60 = vadd.f32 %v346_v58, %v345_v56  ;;  %v399_v61 = vrot.slane %v398_v59, 2 }
  0xf4   :  { %v348_v62 = vrot.slane %v347_v60, 1  ;;  %v400_v63 = vadd.f32 %v399_v61, %v398_v59 }
  0xf6   :  { %v401_v0 = vrot.slane %v400_v63, 1  ;;  %v349_v1 = vadd.f32 %v348_v62, %v347_v60 }
  0xf8   :  { %v402_v2 = vadd.f32 %v401_v0, %v400_v63 }
  0xfa   :  { %v404_v3 = vsel %vm403_vm1, %v349_v1, %v402_v2 }
  0xfb   :  { %406 = vst.msk [vmem:[%s834_s3] sm:$0x3] %vm405_vm2, %v404_v3 }

// kernel: tile.39
= control target key start
LH: loop header
LB: loop body
LE: loop exit
PB: predicated region body
PF: predicated region fallthrough
CT: control target
= control target key end

     0   :  { %s37_s8 = smov 32   ;;  %s38_s9 = smov 64   ;;  %vm7_vm0 = vcmask 261120   ;;  %vm13_vm1 = vcmask 1048320   ;;  %vm19_vm2 = vcmask 785920   ;;  %vm25_vm3 = vcmask 523520   ;;  %s55_s0 = inlined_call_operand.vmem [shape: f32[4,32], index: 0, kind: input, shape index: {}]   ;;  %s56_s1 = inlined_call_operand.vmem [shape: f32[1,128], index: 1, kind: output, shape index: {}]  }
   0x1   :  { %v4_v0 = vld [vmem:[%s55_s0] sm:$0xf]  ;;  %s36_s0 = smov 96  }
   0x2   :  { %5 = vst [vmem:[#allocation1] sm:$0xf] %v4_v0 }
   0x9   :  { %v10_v1 = vld [vmem:[#allocation1 + $0x3] sm:$0x1]   ;;  %v22_v2 = vld [vmem:[#allocation1 + $0x1] sm:$0x1]   ;;  %v16_v3 = vld [vmem:[#allocation1 + $0x2] sm:$0x1]  }
   0xa   :  { %11 = vrot.lane.b32.xlu0 %v10_v1, %s36_s0  ;;  %23 = vrot.lane.b32.xlu1 %v22_v2, %s37_s8  ;;  %v6_v4 = vld [vmem:[#allocation1] sm:$0x1]  }
   0xb   :  { %8 = vst.msk [vmem:[#allocation0] sm:$0x1] %vm7_vm0, %v6_v4  }
  0x12   :  { %17 = vrot.lane.b32.xlu0 %v16_v3, %s38_s9 }
  0x7c   :  { %v12_v5 = vpop.permute.xlu0 %11   ;;  %v24_v6 = vpop.permute.xlu1 %23  }
  0x7d   :  { %14 = vst.msk [vmem:[#allocation0] sm:$0x1] %vm13_vm1, %v12_v5  }
  0x84   :  { %v18_v7 = vpop.permute.xlu0 %17  }
  0x85   :  { %20 = vst.msk [vmem:[#allocation0] sm:$0x1] %vm19_vm2, %v18_v7  }
  0x86   :  { %26 = vst.msk [vmem:[#allocation0] sm:$0x1] %vm25_vm3, %v24_v6  }
  0x8d   :  { %v29_v8 = vld [vmem:[#allocation0] sm:$0x1] }
  0x8e   :  { %32 = vst [vmem:[%s56_s1] sm:$0x1] %v29_v8 }

// kernel: generator_forward.16
= control target key start
LH: loop header
LB: loop body
LE: loop exit
PB: predicated region body
PF: predicated region fallthrough
CT: control target
= control target key end

     0   :  { %vm105_vm0 = vcmask 130048   ;;  %s355_s0 = inlined_call_operand.vmem [shape: f32[128,16], index: 0, kind: input, shape index: {}, may-alias: {0,4}]   ;;  %s356_s1 = inlined_call_operand.vmem [shape: f32[1,16], index: 1, kind: input, shape index: {}]   ;;  %s357_s2 = inlined_call_operand.vmem [shape: f32[1,16], index: 2, kind: input, shape index: {}]   ;;  %s358_s3 = inlined_call_operand.vmem [shape: f32[128,16], index: 3, kind: input, shape index: {}]   ;;  %s359_s4 = inlined_call_operand.vmem [shape: f32[128,16], index: 4, kind: output, shape index: {}, may-alias: {0,4}]  }
   0x1   :  { %v17_v0 = vld [vmem:[%s355_s0] sm:$0xff]  ;;  %v18_v4 = vld [vmem:[%s355_s0 + $0x8] sm:$0xff]  ;;  %v19_v5 = vld [vmem:[%s355_s0 + $0x10] sm:$0xff] }
   0x2   :  { %v159_v1 = vld [vmem:[%s356_s1] ss:$0 sm:$0xff]  ;;  %v74_v8 = vld [vmem:[%s358_s3 + $0x8] sm:$0xff]  ;;  %v20_v10 = vld [vmem:[%s355_s0 + $0x18] sm:$0xff] }
   0x3   :  { %v164_v2 = vld [vmem:[%s357_s2] ss:$0 sm:$0xff]  ;;  %v37_v3 = vmul.f32 %v159_v1, %v17_v0  ;;  %v38_v7 = vmul.f32 %v159_v1, %v18_v4  ;;  %v39_v9 = vmul.f32 %v159_v1, %v19_v5  ;;  %v75_v12 = vld [vmem:[%s358_s3 + $0x10] sm:$0xff]  ;;  %v40_v13 = vmul.f32 %v159_v1, %v20_v10  ;;  %v22_v15 = vld [vmem:[%s355_s0 + $0x28] sm:$0xff] }
   0x4   :  { %v73_v6 = vld [vmem:[%s358_s3] sm:$0xff]  ;;  %v76_v18 = vld [vmem:[%s358_s3 + $0x18] sm:$0xff]  ;;  %v42_v21 = vmul.f32 %v159_v1, %v22_v15  ;;  %v23_v22 = vld [vmem:[%s355_s0 + $0x30] sm:$0xff] }
   0x5   :  { %v57_v11 = vadd.f32 %v164_v2, %v37_v3  ;;  %v21_v14 = vld [vmem:[%s355_s0 + $0x20] sm:$0xff]  ;;  %v58_v16 = vadd.f32 %v164_v2, %v38_v7  ;;  %v59_v17 = vadd.f32 %v164_v2, %v39_v9  ;;  %v60_v24 = vadd.f32 %v164_v2, %v40_v13  ;;  %v78_v25 = vld [vmem:[%s358_s3 + $0x28] sm:$0xff]  ;;  %v24_v27 = vld [vmem:[%s355_s0 + $0x38] sm:$0xff] }
   0x6   :  { %v41_v19 = vmul.f32 %v159_v1, %v21_v14  ;;  %v77_v20 = vld [vmem:[%s358_s3 + $0x20] sm:$0xff]  ;;  %v43_v26 = vmul.f32 %v159_v1, %v23_v22  ;;  %v62_v32 = vadd.f32 %v164_v2, %v42_v21  ;;  %v79_v33 = vld [vmem:[%s358_s3 + $0x30] sm:$0xff]  ;;  %v26_v34 = vld [vmem:[%s355_s0 + $0x48] sm:$0xff]  ;;  %v44_v37 = vmul.f32 %v159_v1, %v24_v27 }
   0x7   :  { %v89_v23 = vadd.f32 %v73_v6, %v57_v11  ;;  %v25_v28 = vld [vmem:[%s355_s0 + $0x40] sm:$0xff]  ;;  %v90_v29 = vadd.f32 %v74_v8, %v58_v16  ;;  %v91_v30 = vadd.f32 %v75_v12, %v59_v17  ;;  %v92_v35 = vadd.f32 %v76_v18, %v60_v24  ;;  %v80_v43 = vld [vmem:[%s358_s3 + $0x38] sm:$0xff]  ;;  %v82_v51 = vld [vmem:[%s358_s3 + $0x48] sm:$0xff] }
   0x8   :  { %v61_v31 = vadd.f32 %v164_v2, %v41_v19  ;;  %v63_v36 = vadd.f32 %v164_v2, %v43_v26  ;;  %v45_v38 = vmul.f32 %v159_v1, %v25_v28  ;;  %v94_v42 = vadd.f32 %v78_v25, %v62_v32  ;;  %v81_v44 = vld [vmem:[%s358_s3 + $0x40] sm:$0xff]  ;;  %v83_v57 = vld [vmem:[%s358_s3 + $0x50] sm:$0xff]  ;;  %v84_v0 = vld [vmem:[%s358_s3 + $0x58] sm:$0xff] }
   0x9   :  { %106 = vst.msk [vmem:[%s359_s4] sm:$0xff] %vm105_vm0, %v89_v23  ;;  %v46_v45 = vmul.f32 %v159_v1, %v26_v34  ;;  %v64_v49 = vadd.f32 %v164_v2, %v44_v37  ;;  %v85_v6 = vld [vmem:[%s358_s3 + $0x60] sm:$0xff]  ;;  %v86_v9 = vld [vmem:[%s358_s3 + $0x68] sm:$0xff]  ;;  %v87_v13 = vld [vmem:[%s358_s3 + $0x70] sm:$0xff] }
   0xa   :  { %v93_v41 = vadd.f32 %v77_v20, %v61_v31  ;;  %v95_v48 = vadd.f32 %v79_v33, %v63_v36  ;;  %v65_v50 = vadd.f32 %v164_v2, %v45_v38 }
   0xb   :  { %v66_v55 = vadd.f32 %v164_v2, %v46_v45  ;;  %v96_v61 = vadd.f32 %v80_v43, %v64_v49 }
   0xc   :  { %v97_v62 = vadd.f32 %v81_v44, %v65_v50 }
   0xd   :  { %v98_v4 = vadd.f32 %v82_v51, %v66_v55 }
  0x10   :  { %v27_v39 = vld [vmem:[%s355_s0 + $0x50] sm:$0xff]  ;;  %v28_v40 = vld [vmem:[%s355_s0 + $0x58] sm:$0xff] }
  0x11   :  { %107 = vst.msk [vmem:[%s359_s4 + $0x8] sm:$0xff] %vm105_vm0, %v90_v29  ;;  %v47_v46 = vmul.f32 %v159_v1, %v27_v39  ;;  %v48_v52 = vmul.f32 %v159_v1, %v28_v40 }
  0x13   :  { %v67_v56 = vadd.f32 %v164_v2, %v47_v46  ;;  %v68_v63 = vadd.f32 %v164_v2, %v48_v52 }
  0x15   :  { %v99_v8 = vadd.f32 %v83_v57, %v67_v56  ;;  %v100_v12 = vadd.f32 %v84_v0, %v68_v63 }
  0x18   :  { %v29_v47 = vld [vmem:[%s355_s0 + $0x60] sm:$0xff] }
  0x19   :  { %108 = vst.msk [vmem:[%s359_s4 + $0x10] sm:$0xff] %vm105_vm0, %v91_v30  ;;  %v49_v58 = vmul.f32 %v159_v1, %v29_v47 }
  0x1b   :  { %v69_v5 = vadd.f32 %v164_v2, %v49_v58 }
  0x1d   :  { %v101_v14 = vadd.f32 %v85_v6, %v69_v5 }
  0x20   :  { %v30_v53 = vld [vmem:[%s355_s0 + $0x68] sm:$0xff]  ;;  %v31_v54 = vld [vmem:[%s355_s0 + $0x70] sm:$0xff] }
  0x21   :  { %109 = vst.msk [vmem:[%s359_s4 + $0x18] sm:$0xff] %vm105_vm0, %v92_v35  ;;  %v50_v59 = vmul.f32 %v159_v1, %v30_v53  ;;  %v51_v3 = vmul.f32 %v159_v1, %v31_v54 }
  0x23   :  { %v70_v7 = vadd.f32 %v164_v2, %v50_v59  ;;  %v71_v10 = vadd.f32 %v164_v2, %v51_v3 }
  0x25   :  { %v102_v16 = vadd.f32 %v86_v9, %v70_v7  ;;  %v103_v17 = vadd.f32 %v87_v13, %v71_v10 }
  0x28   :  { %v32_v60 = vld [vmem:[%s355_s0 + $0x78] sm:$0xff] }
  0x29   :  { %110 = vst.msk [vmem:[%s359_s4 + $0x20] sm:$0xff] %vm105_vm0, %v93_v41  ;;  %v52_v11 = vmul.f32 %v159_v1, %v32_v60  ;;  %v88_v1 = vld [vmem:[%s358_s3 + $0x78] sm:$0xff] }
  0x2a   :  { %111 = vst.msk [vmem:[%s359_s4 + $0x28] sm:$0xff] %vm105_vm0, %v94_v42 }
  0x2b   :  { %112 = vst.msk [vmem:[%s359_s4 + $0x30] sm:$0xff] %vm105_vm0, %v95_v48  ;;  %v72_v15 = vadd.f32 %v164_v2, %v52_v11 }
  0x2c   :  { %113 = vst.msk [vmem:[%s359_s4 + $0x38] sm:$0xff] %vm105_vm0, %v96_v61 }
  0x2d   :  { %114 = vst.msk [vmem:[%s359_s4 + $0x40] sm:$0xff] %vm105_vm0, %v97_v62  ;;  %v104_v2 = vadd.f32 %v88_v1, %v72_v15 }
  0x2e   :  { %115 = vst.msk [vmem:[%s359_s4 + $0x48] sm:$0xff] %vm105_vm0, %v98_v4 }
  0x2f   :  { %116 = vst.msk [vmem:[%s359_s4 + $0x50] sm:$0xff] %vm105_vm0, %v99_v8 }
  0x30   :  { %117 = vst.msk [vmem:[%s359_s4 + $0x58] sm:$0xff] %vm105_vm0, %v100_v12 }
  0x31   :  { %118 = vst.msk [vmem:[%s359_s4 + $0x60] sm:$0xff] %vm105_vm0, %v101_v14 }
  0x32   :  { %119 = vst.msk [vmem:[%s359_s4 + $0x68] sm:$0xff] %vm105_vm0, %v102_v16 }
  0x33   :  { %120 = vst.msk [vmem:[%s359_s4 + $0x70] sm:$0xff] %vm105_vm0, %v103_v17 }
  0x34   :  { %121 = vst.msk [vmem:[%s359_s4 + $0x78] sm:$0xff] %vm105_vm0, %v104_v2 }

// kernel: generator_forward.17
= control target key start
LH: loop header
LB: loop body
LE: loop exit
PB: predicated region body
PF: predicated region fallthrough
CT: control target
= control target key end

     0   :  { %vm179_vm0 = vcmask 130048   ;;  %s733_s1 = inlined_call_operand.vmem [shape: bf16[144,128], index: 1, kind: input, shape index: {}]   ;;  %s734_s0 = inlined_call_operand.vmem [shape: bf16[128,144], index: 0, kind: input, shape index: {}]   ;;  %s735_s2 = inlined_call_operand.vmem [shape: f32[1,128], index: 2, kind: input, shape index: {}]   ;;  %s736_s3 = inlined_call_operand.vmem [shape: f32[128,128], index: 3, kind: output, shape index: {}]  }
   0x1   :  { %v469_v0 = vld [vmem:[%s733_s1 + $0x38] sm:$0xff]  ;;  %v470_v1 = vld [vmem:[%s733_s1 + $0x40] sm:$0xff]  ;;  %v342_v3 = vld [vmem:[%s734_s0 + $0x8] sm:$0xf0] }
   0x2   :  { %v446_v2 = vld [vmem:[%s734_s0 + $0x4] sm:$0xf]  ;;  %204 = vmatpush.bf16.msra.mxu0 %v469_v0  ;;  %471 = vmatpush.bf16.msra.mxu2 %v469_v0  ;;  %v468_v5 = vld [vmem:[%s733_s1 + $0x30] sm:$0xff]  ;;  %v467_v6 = vld [vmem:[%s733_s1 + $0x28] sm:$0xff] }
   0x3   :  { %v345_v4 = vor.u32 %v446_v2, %v342_v3  ;;  %260 = vmatpush.bf16.msra.mxu1 %v470_v1  ;;  %479 = vmatpush.bf16.msra.mxu3 %v470_v1  ;;  %v456_v7 = vld [vmem:[%s734_s0 + $0x54] sm:$0xf]  ;;  %v382_v8 = vld [vmem:[%s734_s0 + $0x58] sm:$0xf0]  ;;  %v466_v10 = vld [vmem:[%s733_s1 + $0x20] sm:$0xff] }
   0x4   :  { %v385_v9 = vor.u32 %v456_v7, %v382_v8  ;;  %v465_v11 = vld [vmem:[%s733_s1 + $0x18] sm:$0xff]  ;;  %v448_v12 = vld [vmem:[%s734_s0 + $0x14] sm:$0xf]  ;;  %v463_v16 = vld [vmem:[%s733_s1 + $0x8] sm:$0xff] }
   0x5   :  { %v350_v13 = vld [vmem:[%s734_s0 + $0x18] sm:$0xf0]  ;;  %v464_v15 = vld [vmem:[%s733_s1 + $0x10] sm:$0xff]  ;;  %v458_v17 = vld [vmem:[%s734_s0 + $0x64] sm:$0xf] }
   0x6   :  { %438 = vmatmul.msk.bf16.vlgmr.msra.gmra.mxu1 %vm179_vm0, %v345_v4  ;;  %205 = vmatpush.bf16.msra.mxu0 %v468_v5  ;;  %v353_v14 = vor.u32 %v448_v12, %v350_v13  ;;  %v390_v18 = vld [vmem:[%s734_s0 + $0x68] sm:$0xf0]  ;;  %v462_v20 = vld [vmem:[%s733_s1] sm:$0xff]  ;;  %v447_v22 = vld [vmem:[%s734_s0 + $0x4] sm:$0xf0] }
   0x7   :  { %472 = vmatpush.bf16.msra.mxu2 %v468_v5  ;;  %443 = vmatmul.msk.bf16.vlgmr.msra.gmra.mxu3 %vm179_vm0, %v385_v9  ;;  %v393_v19 = vor.u32 %v458_v17, %v390_v18  ;;  %v340_v21 = vld [vmem:[%s734_s0] sm:$0xf]  ;;  %v455_v24 = vld [vmem:[%s734_s0 + $0x44] sm:$0xf0]  ;;  %v450_v27 = vld [vmem:[%s734_s0 + $0x24] sm:$0xf] }
   0x8   :  { %v372_v23 = vld [vmem:[%s734_s0 + $0x40] sm:$0xf]  ;;  %v341_v25 = vor.u32 %v447_v22, %v340_v21  ;;  %v358_v28 = vld [vmem:[%s734_s0 + $0x28] sm:$0xf0]  ;;  %v460_v30 = vld [vmem:[%s734_s0 + $0x74] sm:$0xf] }
   0x9   :  { %v373_v26 = vor.u32 %v455_v24, %v372_v23  ;;  %v361_v29 = vor.u32 %v450_v27, %v358_v28  ;;  %v398_v31 = vld [vmem:[%s734_s0 + $0x78] sm:$0xf0]  ;;  %v348_v33 = vld [vmem:[%s734_s0 + $0x10] sm:$0xf]  ;;  %v449_v34 = vld [vmem:[%s734_s0 + $0x14] sm:$0xf0] }
   0xa   :  { %206 = vmatpush.bf16.msra.mxu0 %v467_v6  ;;  %v401_v32 = vor.u32 %v460_v30, %v398_v31  ;;  %v380_v35 = vld [vmem:[%s734_s0 + $0x50] sm:$0xf]  ;;  %v457_v36 = vld [vmem:[%s734_s0 + $0x54] sm:$0xf0]  ;;  %v349_v37 = vor.u32 %v449_v34, %v348_v33  ;;  %v452_v39 = vld [vmem:[%s734_s0 + $0x34] sm:$0xf] }
   0xb   :  { %473 = vmatpush.bf16.msra.mxu2 %v467_v6  ;;  %v381_v38 = vor.u32 %v457_v36, %v380_v35  ;;  %v366_v40 = vld [vmem:[%s734_s0 + $0x38] sm:$0xf0]  ;;  %v356_v42 = vld [vmem:[%s734_s0 + $0x20] sm:$0xf]  ;;  %v451_v43 = vld [vmem:[%s734_s0 + $0x24] sm:$0xf0] }
   0xc   :  { %v369_v41 = vor.u32 %v452_v39, %v366_v40  ;;  %v388_v44 = vld [vmem:[%s734_s0 + $0x60] sm:$0xf]  ;;  %v459_v45 = vld [vmem:[%s734_s0 + $0x64] sm:$0xf0]  ;;  %v357_v46 = vor.u32 %v451_v43, %v356_v42  ;;  %v454_v48 = vld [vmem:[%s734_s0 + $0x44] sm:$0xf] }
   0xd   :  { %v389_v47 = vor.u32 %v459_v45, %v388_v44  ;;  %v374_v49 = vld [vmem:[%s734_s0 + $0x48] sm:$0xf0]  ;;  %v364_v51 = vld [vmem:[%s734_s0 + $0x30] sm:$0xf]  ;;  %v453_v52 = vld [vmem:[%s734_s0 + $0x34] sm:$0xf0] }
   0xe   :  { %207 = vmatpush.bf16.msra.mxu0 %v466_v10  ;;  %v377_v50 = vor.u32 %v454_v48, %v374_v49  ;;  %v396_v53 = vld [vmem:[%s734_s0 + $0x70] sm:$0xf]  ;;  %v461_v54 = vld [vmem:[%s734_s0 + $0x74] sm:$0xf0]  ;;  %v365_v55 = vor.u32 %v453_v52, %v364_v51  ;;  %v667_v61 = vld [vmem:[%s735_s2] ss:$0 sm:$0xff] }
   0xf   :  { %474 = vmatpush.bf16.msra.mxu2 %v466_v10  ;;  %v397_v56 = vor.u32 %v461_v54, %v396_v53 }
  0x12   :  { %208 = vmatpush.bf16.msra.mxu0 %v465_v11 }
  0x13   :  { %475 = vmatpush.bf16.msra.mxu2 %v465_v11 }
  0x16   :  { %439 = vmatmul.msk.bf16.gmra.mxu1 %vm179_vm0, %v353_v14  ;;  %209 = vmatpush.bf16.msra.mxu0 %v464_v15 }
  0x17   :  { %476 = vmatpush.bf16.msra.mxu2 %v464_v15  ;;  %444 = vmatmul.msk.bf16.gmra.mxu3 %vm179_vm0, %v393_v19 }
  0x1a   :  { %210 = vmatpush.bf16.msra.mxu0 %v463_v16 }
  0x1b   :  { %477 = vmatpush.bf16.msra.mxu2 %v463_v16 }
  0x1e   :  { %211 = vmatpush.bf16.msra.mxu0 %v462_v20 }
  0x1f   :  { %478 = vmatpush.bf16.msra.mxu2 %v462_v20 }
  0x21   :  { %212 = vmatmul.bf16.vlgmr.msra.gmra.mxu0 %v341_v25 }
  0x22   :  { %232 = vmatmul.bf16.vlgmr.msra.gmra.mxu2 %v373_v26 }
  0x26   :  { %440 = vmatmul.msk.bf16.gmra.mxu1 %vm179_vm0, %v361_v29 }
  0x27   :  { %445 = vmatmul.msk.bf16.gmra.mxu3 %vm179_vm0, %v401_v32 }
  0x31   :  { %217 = vmatmul.bf16.gmra.mxu0 %v349_v37 }
  0x32   :  { %237 = vmatmul.bf16.gmra.mxu2 %v381_v38 }
  0x36   :  { %441 = vmatmul.msk.bf16.gmra.mxu1 %vm179_vm0, %v369_v41 }
  0x41   :  { %222 = vmatmul.bf16.gmra.mxu0 %v357_v46 }
  0x42   :  { %242 = vmatmul.bf16.gmra.mxu2 %v389_v47 }
  0x46   :  { %442 = vmatmul.msk.bf16.gmra.mxu1 %vm179_vm0, %v377_v50 }
  0x51   :  { %227 = vmatmul.bf16.gmra.mxu0 %v365_v55 }
  0x52   :  { %247 = vmatmul.bf16.gmra.mxu2 %v397_v56 }
  0x83   :  { %v262_v57 = vpop.f32.mrf.mxu1 }
  0x8a   :  { %v287_v9 = vpop.f32.mrf.mxu3 }
  0x8b   :  { %v264_v58 = vpop.f32.mrf.mxu1 }
  0x92   :  { %v289_v19 = vpop.f32.mrf.mxu3 }
  0x93   :  { %v267_v59 = vpop.f32.mrf.mxu1 }
  0x9a   :  { %v292_v32 = vpop.f32.mrf.mxu3 }
  0x9b   :  { %v269_v60 = vpop.f32.mrf.mxu1 }
  0x9e   :  { %v213_v62 = vpop.f32.mrf.mxu0 }
  0x9f   :  { %v214_v63 = vadd.f32 %v667_v61, %v213_v62 }
  0xa1   :  { %v263_v0 = vadd.f32 %v262_v57, %v214_v63 }
  0xa2   :  { %v294_v45 = vpop.f32.mrf.mxu3 }
  0xa3   :  { %481 = vtanh.f32 %v263_v0  ;;  %v272_v1 = vpop.f32.mrf.mxu1 }
  0xa5   :  { %v233_v2 = vpop.f32.mrf.mxu2 }
  0xa6   :  { %v215_v3 = vpop.f32.mrf.mxu0  ;;  %v234_v33 = vadd.f32 %v667_v61, %v233_v2 }
  0xa7   :  { %v216_v4 = vadd.f32 %v667_v61, %v215_v3 }
  0xa9   :  { %v482_v5 = vpop.eup %481  ;;  %v265_v6 = vadd.f32 %v264_v58, %v216_v4 }
  0xaa   :  { %318 = vst [vmem:[%s736_s3] sm:$0xff] %v482_v5  ;;  %v297_v58 = vpop.f32.mrf.mxu3 }
  0xab   :  { %483 = vtanh.f32 %v265_v6  ;;  %v274_v7 = vpop.f32.mrf.mxu1 }
  0xad   :  { %v235_v8 = vpop.f32.mrf.mxu2 }
  0xae   :  { %v218_v10 = vpop.f32.mrf.mxu0  ;;  %v236_v44 = vadd.f32 %v667_v61, %v235_v8 }
  0xaf   :  { %v219_v11 = vadd.f32 %v667_v61, %v218_v10 }
  0xb1   :  { %v484_v12 = vpop.eup %483  ;;  %v268_v13 = vadd.f32 %v267_v59, %v219_v11 }
  0xb2   :  { %319 = vst [vmem:[%s736_s3 + $0x8] sm:$0xff] %v484_v12  ;;  %v299_v6 = vpop.f32.mrf.mxu3 }
  0xb3   :  { %485 = vtanh.f32 %v268_v13  ;;  %v277_v14 = vpop.f32.mrf.mxu1 }
  0xb5   :  { %v238_v15 = vpop.f32.mrf.mxu2 }
  0xb6   :  { %v239_v16 = vadd.f32 %v667_v61, %v238_v15  ;;  %v220_v17 = vpop.f32.mrf.mxu0 }
  0xb7   :  { %v221_v18 = vadd.f32 %v667_v61, %v220_v17 }
  0xb8   :  { %v288_v20 = vadd.f32 %v287_v9, %v239_v16 }
  0xb9   :  { %v486_v21 = vpop.eup %485  ;;  %v270_v22 = vadd.f32 %v269_v60, %v221_v18 }
  0xba   :  { %320 = vst [vmem:[%s736_s3 + $0x10] sm:$0xff] %v486_v21  ;;  %487 = vtanh.f32 %v288_v20 }
  0xbb   :  { %489 = vtanh.f32 %v270_v22  ;;  %v279_v23 = vpop.f32.mrf.mxu1 }
  0xbd   :  { %v240_v24 = vpop.f32.mrf.mxu2 }
  0xbe   :  { %v241_v25 = vadd.f32 %v667_v61, %v240_v24  ;;  %v223_v26 = vpop.f32.mrf.mxu0 }
  0xbf   :  { %v224_v27 = vadd.f32 %v667_v61, %v223_v26 }
  0xc0   :  { %v488_v28 = vpop.eup %487  ;;  %v290_v29 = vadd.f32 %v289_v19, %v241_v25 }
  0xc1   :  { %v490_v30 = vpop.eup %489  ;;  %328 = vst [vmem:[%s736_s3 + $0x50] sm:$0xff] %v488_v28  ;;  %v273_v31 = vadd.f32 %v272_v1, %v224_v27 }
  0xc2   :  { %321 = vst [vmem:[%s736_s3 + $0x18] sm:$0xff] %v490_v30  ;;  %491 = vtanh.f32 %v290_v29 }
  0xc3   :  { %493 = vtanh.f32 %v273_v31  ;;  %v282_v34 = vpop.f32.mrf.mxu1 }
  0xc4   :  { %v283_v35 = vadd.f32 %v282_v34, %v234_v33 }
  0xc5   :  { %v243_v36 = vpop.f32.mrf.mxu2 }
  0xc6   :  { %495 = vtanh.f32 %v283_v35  ;;  %v244_v37 = vadd.f32 %v667_v61, %v243_v36  ;;  %v225_v38 = vpop.f32.mrf.mxu0 }
  0xc7   :  { %v226_v39 = vadd.f32 %v667_v61, %v225_v38 }
  0xc8   :  { %v492_v40 = vpop.eup %491  ;;  %v293_v41 = vadd.f32 %v292_v32, %v244_v37 }
  0xc9   :  { %v494_v42 = vpop.eup %493  ;;  %329 = vst [vmem:[%s736_s3 + $0x58] sm:$0xff] %v492_v40  ;;  %v275_v43 = vadd.f32 %v274_v7, %v226_v39 }
  0xca   :  { %322 = vst [vmem:[%s736_s3 + $0x20] sm:$0xff] %v494_v42  ;;  %497 = vtanh.f32 %v293_v41 }
  0xcb   :  { %499 = vtanh.f32 %v275_v43  ;;  %v284_v46 = vpop.f32.mrf.mxu1 }
  0xcc   :  { %v496_v47 = vpop.eup %495  ;;  %v285_v48 = vadd.f32 %v284_v46, %v236_v44 }
  0xcd   :  { %326 = vst [vmem:[%s736_s3 + $0x40] sm:$0xff] %v496_v47  ;;  %v245_v49 = vpop.f32.mrf.mxu2 }
  0xce   :  { %501 = vtanh.f32 %v285_v48  ;;  %v246_v50 = vadd.f32 %v667_v61, %v245_v49  ;;  %v228_v51 = vpop.f32.mrf.mxu0 }
  0xcf   :  { %v229_v52 = vadd.f32 %v667_v61, %v228_v51 }
  0xd0   :  { %v498_v53 = vpop.eup %497  ;;  %v295_v54 = vadd.f32 %v294_v45, %v246_v50 }
  0xd1   :  { %v500_v55 = vpop.eup %499  ;;  %330 = vst [vmem:[%s736_s3 + $0x60] sm:$0xff] %v498_v53  ;;  %v278_v56 = vadd.f32 %v277_v14, %v229_v52 }
  0xd2   :  { %323 = vst [vmem:[%s736_s3 + $0x28] sm:$0xff] %v500_v55  ;;  %503 = vtanh.f32 %v295_v54 }
  0xd3   :  { %505 = vtanh.f32 %v278_v56 }
  0xd4   :  { %v502_v57 = vpop.eup %501 }
  0xd5   :  { %327 = vst [vmem:[%s736_s3 + $0x48] sm:$0xff] %v502_v57  ;;  %v248_v59 = vpop.f32.mrf.mxu2 }
  0xd6   :  { %v249_v60 = vadd.f32 %v667_v61, %v248_v59  ;;  %v230_v62 = vpop.f32.mrf.mxu0 }
  0xd7   :  { %v231_v63 = vadd.f32 %v667_v61, %v230_v62 }
  0xd8   :  { %v504_v0 = vpop.eup %503  ;;  %v298_v1 = vadd.f32 %v297_v58, %v249_v60 }
  0xd9   :  { %v506_v2 = vpop.eup %505  ;;  %331 = vst [vmem:[%s736_s3 + $0x68] sm:$0xff] %v504_v0  ;;  %v280_v3 = vadd.f32 %v279_v23, %v231_v63 }
  0xda   :  { %324 = vst [vmem:[%s736_s3 + $0x30] sm:$0xff] %v506_v2  ;;  %507 = vtanh.f32 %v298_v1 }
  0xdb   :  { %509 = vtanh.f32 %v280_v3 }
  0xdd   :  { %v250_v4 = vpop.f32.mrf.mxu2 }
  0xde   :  { %v251_v5 = vadd.f32 %v667_v61, %v250_v4 }
  0xe0   :  { %v508_v7 = vpop.eup %507  ;;  %v300_v8 = vadd.f32 %v299_v6, %v251_v5 }
  0xe1   :  { %v510_v9 = vpop.eup %509  ;;  %332 = vst [vmem:[%s736_s3 + $0x70] sm:$0xff] %v508_v7 }
  0xe2   :  { %325 = vst [vmem:[%s736_s3 + $0x38] sm:$0xff] %v510_v9  ;;  %511 = vtanh.f32 %v300_v8 }
  0xe8   :  { %v512_v10 = vpop.eup %511 }
  0xe9   :  { %333 = vst [vmem:[%s736_s3 + $0x78] sm:$0xff] %v512_v10 }

</bundles_post_ra>
